<compile_context>
chip_gen: v7x
topology: tpu7x:2x2x1
jax: 0.10.0
libtpu: 0.0.40
codegen_flags: <defaults>
</compile_context>

<pallas_src>
import jax
import jax.numpy as jnp
from jax.experimental import pallas as pl
from jax.experimental.pallas import tpu as pltpu


# ---------------------------------------------------------------------------
# Pallas kernel: fused W_g / W_x 1x1 convs (BN folded) + gelu + psi conv + sigmoid.
# ---------------------------------------------------------------------------
def _attention_block_kernel(g_ref, x_ref, wg_ref, wx_ref, bh_ref, wp_ref, bp_ref,
                            out_ref):
    # g_ref:  (1, TN, F_g)   gate features, N on sublanes, channels on lanes
    # x_ref:  (1, TN, F_l)   skip features
    # wg_ref: (F_g, F_int)   folded conv+bn weight (pre-transposed), W_g branch
    # wx_ref: (F_l, F_int)   folded conv+bn weight (pre-transposed), W_x branch
    # bh_ref: (1, F_int)     combined folded bias of both branches
    # wp_ref: (1, F_int)     folded psi conv+bn weight (row vector)
    # bp_ref: (1, 1)         folded psi bias
    # out_ref:(1, TN, 1)     attention coefficients for this (batch, N-tile)
    g = g_ref[0]                                     # (TN, F_g)
    x = x_ref[0]                                     # (TN, F_l)

    # g1 + x1  (two 1x1 convs with BN folded; biases pre-summed into bh).
    h = jnp.dot(g, wg_ref[...], preferred_element_type=jnp.float32)
    h = h + jnp.dot(x, wx_ref[...], preferred_element_type=jnp.float32)
    h = h + bh_ref[...]                              # (TN, F_int)

    # GELU (tanh approximation; lowers to VPU/EUP ops).
    # TODO(synk): F.gelu default is the exact erf form; tanh approx used for
    # guaranteed Mosaic lowering (max abs deviation ~1e-3 pre-sigmoid).
    h = 0.5 * h * (1.0 + jnp.tanh(0.7978845608028654 * (h + 0.044715 * h * h * h)))

    # psi 1x1 conv (F_int -> 1) + BN folded, as a lane reduction, then sigmoid.
    psi = jnp.sum(h * wp_ref[...], axis=-1, keepdims=True) + bp_ref[...]  # (TN, 1)
    psi = jax.nn.sigmoid(psi)

    out_ref[0] = psi.astype(out_ref.dtype)


def _pick_n_tile(n):
    """Largest MXU/lane-friendly tile that divides N (falls back to full N)."""
    for t in (512, 256, 128):
        if n % t == 0:
            return t
    # Small or irregular N: single tile (fine for this script's shapes; very
    # large irregular N would want padding + a masked tail tile instead).
    return n


def attention_block_forward(g, x, params):
    """JAX/Pallas equivalent of Attention_block.forward (BN in inference mode).

    Args:
      g: (B, N, F_g) float32 gating features.
      x: (B, N, F_l) float32 skip-connection features.
      params: dict of folded parameters (see make_folded_params).
    Returns:
      psi: (B, N, 1) float32 attention coefficients in (0, 1).
    """
    B, N, F_g = g.shape
    _, _, F_l = x.shape
    F_int = params["wg_t"].shape[1]

    tn = _pick_n_tile(N)
    grid = (B, N // tn)

    out = pl.pallas_call(
        _attention_block_kernel,
        out_shape=jax.ShapeDtypeStruct((B, N, 1), jnp.float32),
        grid_spec=pltpu.PrefetchScalarGridSpec(
            num_scalar_prefetch=0,
            grid=grid,
            in_specs=[
                pl.BlockSpec((1, tn, F_g), lambda b, n: (b, n, 0)),
                pl.BlockSpec((1, tn, F_l), lambda b, n: (b, n, 0)),
                pl.BlockSpec((F_g, F_int), lambda b, n: (0, 0)),
                pl.BlockSpec((F_l, F_int), lambda b, n: (0, 0)),
                pl.BlockSpec((1, F_int), lambda b, n: (0, 0)),
                pl.BlockSpec((1, F_int), lambda b, n: (0, 0)),
                pl.BlockSpec((1, 1), lambda b, n: (0, 0)),
            ],
            out_specs=pl.BlockSpec((1, tn, 1), lambda b, n: (b, n, 0)),
        ),
        compiler_params=pltpu.CompilerParams(
            dimension_semantics=("parallel", "parallel"),
        ),
    )(g, x, params["wg_t"], params["wx_t"], params["bh"],
      params["wp_row"], params["bp"])
    return out


# ---------------------------------------------------------------------------
# Deterministic parameter construction (Conv1d 1x1 + BatchNorm1d, eval mode),
# folded into effective weights/biases.  Plain-JAX glue, runs once.
# ---------------------------------------------------------------------------
def make_folded_params(key, F_g, F_l, F_int, eps=1e-5):
    def conv_bn(k, cin, cout):
        k_w, k_b, k_g, k_be, k_m, k_v = jax.random.split(k, 6)
        w = 0.1 * jax.random.normal(k_w, (cout, cin), dtype=jnp.float32)
        b = 0.1 * jax.random.normal(k_b, (cout,), dtype=jnp.float32)
        gamma = 1.0 + 0.05 * jax.random.normal(k_g, (cout,), dtype=jnp.float32)
        beta = 0.05 * jax.random.normal(k_be, (cout,), dtype=jnp.float32)
        run_mean = 0.05 * jax.random.normal(k_m, (cout,), dtype=jnp.float32)
        run_var = 1.0 + 0.1 * jax.random.uniform(k_v, (cout,), dtype=jnp.float32)
        # TODO(synk): BatchNorm folded in inference mode (running stats);
        # training-mode batch statistics are not reproduced.
        scale = gamma / jnp.sqrt(run_var + eps)
        w_eff = scale[:, None] * w                       # (cout, cin)
        b_eff = scale * (b - run_mean) + beta            # (cout,)
        return w_eff, b_eff

    k1, k2, k3 = jax.random.split(key, 3)
    wg, bg = conv_bn(k1, F_g, F_int)                     # W_g branch
    wx, bx = conv_bn(k2, F_l, F_int)                     # W_x branch
    wp, bp = conv_bn(k3, F_int, 1)                       # psi branch
    return {
        "wg_t": wg.T,                                    # (F_g, F_int)
        "wx_t": wx.T,                                    # (F_l, F_int)
        "bh": (bg + bx).reshape(1, F_int),               # combined branch bias
        "wp_row": wp.reshape(1, F_int),                  # (1, F_int)
        "bp": bp.reshape(1, 1),                          # (1, 1)
    }


def reference_forward(g, x, params):
    """Pure-JAX reference with identical math (BN folded, tanh-approx gelu)."""
    h = (jnp.einsum("bnc,cf->bnf", g, params["wg_t"])
         + jnp.einsum("bnc,cf->bnf", x, params["wx_t"])
         + params["bh"][None])
    h = 0.5 * h * (1.0 + jnp.tanh(0.7978845608028654 * (h + 0.044715 * h * h * h)))
    psi = jnp.sum(h * params["wp_row"][None], axis=-1, keepdims=True)
    psi = psi + params["bp"][None]
    return jax.nn.sigmoid(psi)                           # (B, N, 1)


if __name__ == "__main__":
    B, N = 2, 256
    F_g, F_l, F_int = 32, 16, 32

    key = jax.random.PRNGKey(0)
    k_g, k_x, k_p = jax.random.split(key, 3)
    g = jax.random.normal(k_g, (B, N, F_g), dtype=jnp.float32)
    x = jax.random.normal(k_x, (B, N, F_l), dtype=jnp.float32)
    params = make_folded_params(k_p, F_g, F_l, F_int)

    psi = attention_block_forward(g, x, params)
    psi = jax.block_until_ready(psi)

    ref = reference_forward(g, x, params)
    assert psi.shape == (B, N, 1)
    assert jnp.allclose(psi, ref, atol=1e-4, rtol=1e-4)

    print("KERNEL_OK")
</pallas_src>

<mosaic_0001>
module attributes {stable_mosaic.version = 11 : i64} {
  func.func @_attention_block_kernel(%arg0: i32, %arg1: i32, %arg2: memref<1x256x32xf32, #tpu.memory_space<vmem>>, %arg3: memref<1x256x16xf32, #tpu.memory_space<vmem>>, %arg4: memref<32x32xf32, #tpu.memory_space<vmem>>, %arg5: memref<16x32xf32, #tpu.memory_space<vmem>>, %arg6: memref<1x32xf32, #tpu.memory_space<vmem>>, %arg7: memref<1x32xf32, #tpu.memory_space<vmem>>, %arg8: memref<1x1xf32, #tpu.memory_space<vmem>>, %arg9: memref<1x256x1xf32, #tpu.memory_space<vmem>>) attributes {dimension_semantics = [#tpu.dimension_semantics<parallel>, #tpu.dimension_semantics<parallel>], iteration_bounds = array<i64: 2, 1>, scalar_prefetch = 0 : i64, scratch_operands = 0 : i64, tpu.core_type = #tpu.core_type<tc>, window_params = [{transform_indices = @transform_0, window_bounds = array<i64: 1, 256, 32>}, {transform_indices = @transform_1, window_bounds = array<i64: 1, 256, 16>}, {pipeline_mode = #tpu.pipeline_mode<synchronous>, transform_indices = @transform_2, window_bounds = array<i64: 32, 32>}, {pipeline_mode = #tpu.pipeline_mode<synchronous>, transform_indices = @transform_3, window_bounds = array<i64: 16, 32>}, {pipeline_mode = #tpu.pipeline_mode<synchronous>, transform_indices = @transform_4, window_bounds = array<i64: 1, 32>}, {pipeline_mode = #tpu.pipeline_mode<synchronous>, transform_indices = @transform_5, window_bounds = array<i64: 1, 32>}, {pipeline_mode = #tpu.pipeline_mode<synchronous>, transform_indices = @transform_6, window_bounds = array<i64: 1, 1>}, {transform_indices = @transform_7, window_bounds = array<i64: 1, 256, 1>}]} {
    %c0 = arith.constant 0 : index
    %c0_0 = arith.constant 0 : index
    %c0_1 = arith.constant 0 : index
    %0 = vector.load %arg2[%c0, %c0_0, %c0_1] : memref<1x256x32xf32, #tpu.memory_space<vmem>>, vector<1x256x32xf32>
    %1 = vector.shape_cast %0 : vector<1x256x32xf32> to vector<256x32xf32>
    %c0_2 = arith.constant 0 : index
    %c0_3 = arith.constant 0 : index
    %c0_4 = arith.constant 0 : index
    %2 = vector.load %arg3[%c0_2, %c0_3, %c0_4] : memref<1x256x16xf32, #tpu.memory_space<vmem>>, vector<1x256x16xf32>
    %3 = vector.shape_cast %2 : vector<1x256x16xf32> to vector<256x16xf32>
    %c0_5 = arith.constant 0 : index
    %c0_6 = arith.constant 0 : index
    %4 = vector.load %arg4[%c0_5, %c0_6] : memref<32x32xf32, #tpu.memory_space<vmem>>, vector<32x32xf32>
    %cst = arith.constant dense<0.000000e+00> : vector<256x32xf32>
    %5 = tpu.matmul %1, %4, %cst {dimension_numbers = #tpu.dot_dimension_numbers<[1], [0], [0], [1], [0, 0, 1, 1], [], []>} : vector<256x32xf32>, vector<32x32xf32>, vector<256x32xf32> -> vector<256x32xf32>
    %c0_7 = arith.constant 0 : index
    %c0_8 = arith.constant 0 : index
    %6 = vector.load %arg5[%c0_7, %c0_8] : memref<16x32xf32, #tpu.memory_space<vmem>>, vector<16x32xf32>
    %cst_9 = arith.constant dense<0.000000e+00> : vector<256x32xf32>
    %7 = tpu.matmul %3, %6, %cst_9 {dimension_numbers = #tpu.dot_dimension_numbers<[1], [0], [0], [1], [0, 0, 1, 1], [], []>} : vector<256x16xf32>, vector<16x32xf32>, vector<256x32xf32> -> vector<256x32xf32>
    %8 = arith.addf %5, %7 : vector<256x32xf32>
    %c0_10 = arith.constant 0 : index
    %c0_11 = arith.constant 0 : index
    %9 = vector.load %arg6[%c0_10, %c0_11] : memref<1x32xf32, #tpu.memory_space<vmem>>, vector<1x32xf32>
    %10 = vector.broadcast %9 : vector<1x32xf32> to vector<256x32xf32>
    %11 = arith.addf %8, %10 : vector<256x32xf32>
    %cst_12 = arith.constant 5.000000e-01 : f32
    %12 = vector.broadcast %cst_12 : f32 to vector<256x32xf32>
    %13 = arith.mulf %12, %11 : vector<256x32xf32>
    %cst_13 = arith.constant 4.471500e-02 : f32
    %14 = vector.broadcast %cst_13 : f32 to vector<256x32xf32>
    %15 = arith.mulf %14, %11 : vector<256x32xf32>
    %16 = arith.mulf %15, %11 : vector<256x32xf32>
    %17 = arith.mulf %16, %11 : vector<256x32xf32>
    %18 = arith.addf %11, %17 : vector<256x32xf32>
    %cst_14 = arith.constant 0.797884583 : f32
    %19 = vector.broadcast %cst_14 : f32 to vector<256x32xf32>
    %20 = arith.mulf %19, %18 : vector<256x32xf32>
    %21 = math.tanh %20 : vector<256x32xf32>
    %cst_15 = arith.constant 1.000000e+00 : f32
    %22 = vector.broadcast %cst_15 : f32 to vector<256x32xf32>
    %23 = arith.addf %22, %21 : vector<256x32xf32>
    %24 = arith.mulf %13, %23 : vector<256x32xf32>
    %c0_16 = arith.constant 0 : index
    %c0_17 = arith.constant 0 : index
    %25 = vector.load %arg7[%c0_16, %c0_17] : memref<1x32xf32, #tpu.memory_space<vmem>>, vector<1x32xf32>
    %26 = vector.broadcast %25 : vector<1x32xf32> to vector<256x32xf32>
    %27 = arith.mulf %24, %26 : vector<256x32xf32>
    %cst_18 = arith.constant dense<0.000000e+00> : vector<256xf32>
    %28 = vector.multi_reduction <add>, %27, %cst_18 [1] : vector<256x32xf32> to vector<256xf32>
    %29 = vector.shape_cast %28 : vector<256xf32> to vector<256x1xf32>
    %c0_19 = arith.constant 0 : index
    %c0_20 = arith.constant 0 : index
    %30 = vector.load %arg8[%c0_19, %c0_20] : memref<1x1xf32, #tpu.memory_space<vmem>>, vector<1x1xf32>
    %31 = vector.broadcast %30 : vector<1x1xf32> to vector<256x1xf32>
    %32 = arith.addf %29, %31 : vector<256x1xf32>
    %33 = arith.negf %32 : vector<256x1xf32>
    %34 = math.exp %33 : vector<256x1xf32>
    %cst_21 = arith.constant 1.000000e+00 : f32
    %35 = vector.broadcast %cst_21 : f32 to vector<256x1xf32>
    %36 = arith.addf %35, %34 : vector<256x1xf32>
    %37 = arith.divf %35, %36 : vector<256x1xf32>
    %c0_22 = arith.constant 0 : index
    %c0_23 = arith.constant 0 : index
    %c0_24 = arith.constant 0 : index
    %38 = vector.load %arg9[%c0_22, %c0_23, %c0_24] : memref<1x256x1xf32, #tpu.memory_space<vmem>>, vector<1x256x1xf32>
    %39 = vector.shape_cast %38 : vector<1x256x1xf32> to vector<256x1xf32>
    %40 = vector.shape_cast %37 : vector<256x1xf32> to vector<1x256x1xf32>
    tpu.vector_store %arg9[%c0_22, %c0_23, %c0_24], %40 {strides = array<i32>} : memref<1x256x1xf32, #tpu.memory_space<vmem>>, vector<1x256x1xf32>,
    return
  }
  func.func @transform_0(%arg0: i32, %arg1: i32) -> (i32, i32, i32) {
    %c0_i32 = arith.constant 0 : i32
    %c0_i32_0 = arith.constant 0 : i32
    return %arg0, %arg1, %c0_i32 : i32, i32, i32
  }
  func.func @transform_1(%arg0: i32, %arg1: i32) -> (i32, i32, i32) {
    %c0_i32 = arith.constant 0 : i32
    %c0_i32_0 = arith.constant 0 : i32
    return %arg0, %arg1, %c0_i32 : i32, i32, i32
  }
  func.func @transform_2(%arg0: i32, %arg1: i32) -> (i32, i32) {
    %c0_i32 = arith.constant 0 : i32
    %c0_i32_0 = arith.constant 0 : i32
    %c0_i32_1 = arith.constant 0 : i32
    return %c0_i32, %c0_i32_0 : i32, i32
  }
  func.func @transform_3(%arg0: i32, %arg1: i32) -> (i32, i32) {
    %c0_i32 = arith.constant 0 : i32
    %c0_i32_0 = arith.constant 0 : i32
    %c0_i32_1 = arith.constant 0 : i32
    return %c0_i32, %c0_i32_0 : i32, i32
  }
  func.func @transform_4(%arg0: i32, %arg1: i32) -> (i32, i32) {
    %c0_i32 = arith.constant 0 : i32
    %c0_i32_0 = arith.constant 0 : i32
    %c0_i32_1 = arith.constant 0 : i32
    return %c0_i32, %c0_i32_0 : i32, i32
  }
  func.func @transform_5(%arg0: i32, %arg1: i32) -> (i32, i32) {
    %c0_i32 = arith.constant 0 : i32
    %c0_i32_0 = arith.constant 0 : i32
    %c0_i32_1 = arith.constant 0 : i32
    return %c0_i32, %c0_i32_0 : i32, i32
  }
  func.func @transform_6(%arg0: i32, %arg1: i32) -> (i32, i32) {
    %c0_i32 = arith.constant 0 : i32
    %c0_i32_0 = arith.constant 0 : i32
    %c0_i32_1 = arith.constant 0 : i32
    return %c0_i32, %c0_i32_0 : i32, i32
  }
  func.func @transform_7(%arg0: i32, %arg1: i32) -> (i32, i32, i32) {
    %c0_i32 = arith.constant 0 : i32
    %c0_i32_0 = arith.constant 0 : i32
    return %arg0, %arg1, %c0_i32 : i32, i32, i32
  }
}

</mosaic_0001>

<bundles_post_ra>
// kernel: tpu_custom_call.1
= control target key start
LH: loop header
LB: loop body
LE: loop exit
PB: predicated region body
PF: predicated region fallthrough
CT: control target
= control target key end

     0   :  { %s2521_s26 = smov 0   ;;  %s2523_s27 = smov 0   ;;  %s3230_s0 = inlined_call_operand.vmem [shape: f32[2,256,32], index: 0, kind: input, shape index: {}]   ;;  %s3231_s1 = inlined_call_operand.vmem [shape: f32[2,256,16], index: 1, kind: input, shape index: {}]   ;;  %s3232_s2 = inlined_call_operand.vmem [shape: f32[32,32], index: 2, kind: input, shape index: {}]   ;;  %s3233_s3 = inlined_call_operand.vmem [shape: f32[16,32], index: 3, kind: input, shape index: {}]   ;;  %s3234_s4 = inlined_call_operand.vmem [shape: f32[1,32], index: 4, kind: input, shape index: {}]   ;;  %s3235_s5 = inlined_call_operand.vmem [shape: f32[1,32], index: 5, kind: input, shape index: {}]   ;;  %s3236_s6 = inlined_call_operand.<no memory space> [shape: f32[1,1], index: 6, kind: input, shape index: {}]   ;;  %s3237_s7 = inlined_call_operand.vmem [shape: f32[2,256,1], index: 7, kind: output, shape index: {}]  }
   0x1   :  { %v12_v0 = vstv %s3236_s6  ;;  %s2525_s28 = smov 0  }
   0x2   :  { %13 = vst [vmem:[#allocation2] sm:$0x1] %v12_v0 }
   0x3 LB: > { %s31_s6 = sadd.s32 1, %s2472_s27  ;;  %p1905_p0 = scmp.ge.s32.totalorder %s2476_s28, 1  ;;  %s2476_s28 = sphi %s2525_s28, %s19_s28   ;;  %s2472_s27 = sphi %s2523_s27, %s3239_s27   ;;  %s2468_s26 = sphi %s2521_s26, %s3238_s26  }
   0x4   : > { %p33_p1 = scmp.ge.s32.totalorder %s31_s6, 2  ;;  %p277_p2 = scmp.lt.s32.totalorder %s2476_s28, 3 }
   0x6   : > { %s3241_s6 = smov (%p33_p1, %s31_s6), 0  ;;  %p278_p3 = pnand %p1905_p0, %p277_p2 }
   0x7   : > { %v420_v1 = vld [vmem:[%s3232_s2] sm:$0xff] (!%p278_p3)  ;;  %v421_v2 = vld [vmem:[%s3232_s2 + $0x8] sm:$0xff] (!%p278_p3)  ;;  %p327_p4 = scmp.lt.s32.totalorder (!%p278_p3), %s2468_s26, 1  ;;  %v422_v6 = vld [vmem:[%s3232_s2 + $0x10] sm:$0xff] (!%p278_p3)  ;;  %vm426_vm0 = vcmask (!%p278_p3), 130048   ;;  %vm748_vm1 = vcmask (!%p278_p3), 261120  }
   0x8   : > { %281 = sbr.rel (%p278_p3) target bundleno = 527 (0x20f), region = 48  ;;  %v424_v3 = vld [vmem:[%s3233_s3] sm:$0xff] (!%p278_p3)  ;;  %v2198_v4 = vpack.c.bf16 (!%p278_p3), %v421_v2, %v420_v1  ;;  %v425_v5 = vld [vmem:[%s3233_s3 + $0x8] sm:$0xff] (!%p278_p3)  ;;  %v423_v7 = vld [vmem:[%s3232_s2 + $0x18] sm:$0xff] (!%p278_p3)  ;;  %vm1763_vm2 = vcmask (!%p278_p3), 7168  }
   0x9   : > { %v2194_v8 = vpack.c.bf16 (!%p278_p3), %v425_v5, %v424_v3  ;;  %v2202_v9 = vpack.c.bf16 (!%p278_p3), %v423_v7, %v422_v6 }
   0xa   : > { %2199 = vmatprep.subr.bf16.mxu0 (!%p278_p3), %v2198_v4 }
   0xb   : > { %2201 = vmatpush3.bf16.msra.mxu0 (!%p278_p3), %v2198_v4  ;;  %2195 = vmatprep.subr.bf16.mxu1 (!%p278_p3), %v2194_v8 }
   0xc   : > { %2197 = vmatpush3.bf16.msra.mxu1 (!%p278_p3), %v2194_v8  ;;  %2203 = vmatprep.subr.bf16.mxu0 (!%p278_p3), %v2202_v9 }
   0xf   : > { %s3243_s26 = smov (!%p327_p4, %s2468_s26), 1  ;;  %2205 = vmatpush3.bf16.msra.mxu0 %v2202_v9 }
  0x10   : > { %s2557_s18 = sshll.u32 %s3243_s26, 8 }
  0x11   : > { %s2563_s21 = scalar_lea.vmem %s3231_s1, %s2557_s18  ;;  %s2569_s24 = scalar_lea.vmem %s3230_s0, %s2557_s18 }
  0x12   : > { %v388_v10 = vld [vmem:[%s2563_s21] sm:$0xff]  ;;  %v389_v11 = vld [vmem:[%s2563_s21 + $0x8] sm:$0xff]  ;;  %v390_v13 = vld [vmem:[%s2563_s21 + $0x10] sm:$0xff]  ;;  %s3132_s10 = scalar_lea.vmem %s3237_s7, %s2557_s18 }
  0x13   : > { %v356_v12 = vld [vmem:[%s2569_s24] sm:$0xff]  ;;  %2090 = vmatprep.mubr.msk.f32.mxu1 %vm426_vm0, %v388_v10  ;;  %v357_v14 = vld [vmem:[%s2569_s24 + $0x8] sm:$0xff]  ;;  %v391_v15 = vld [vmem:[%s2563_s21 + $0x18] sm:$0xff] }
  0x14   : > { %2146 = vmatprep.mubr.msk.f32.mxu0 %vm748_vm1, %v356_v12  ;;  %2091 = vmatmul.mubr.msk.f32.vlgmr.msra.gmra.mrb[0].mxu1 %vm426_vm0, %v389_v11  ;;  %v358_v16 = vld [vmem:[%s2569_s24 + $0x10] sm:$0xff]  ;;  %v392_v17 = vld [vmem:[%s2563_s21 + $0x20] sm:$0xff]  ;;  %v359_v18 = vld [vmem:[%s2569_s24 + $0x18] sm:$0xff] }
  0x15   : > { %2093 = vmatprep.mubr.msk.f32.mxu1 %vm426_vm0, %v390_v13  ;;  %2147 = vmatmul.mubr.msk.f32.vlgmr.msra.gmra.mrb[0].mxu0 %vm748_vm1, %v357_v14  ;;  %v360_v19 = vld [vmem:[%s2569_s24 + $0x20] sm:$0xff]  ;;  %v393_v20 = vld [vmem:[%s2563_s21 + $0x28] sm:$0xff]  ;;  %v394_v21 = vld [vmem:[%s2563_s21 + $0x30] sm:$0xff] }
  0x16   : > { %2149 = vmatprep.mubr.msk.f32.mxu0 %vm748_vm1, %v358_v16  ;;  %v361_v22 = vld [vmem:[%s2569_s24 + $0x28] sm:$0xff]  ;;  %v362_v23 = vld [vmem:[%s2569_s24 + $0x30] sm:$0xff]  ;;  %v395_v24 = vld [vmem:[%s2563_s21 + $0x38] sm:$0xff] }
  0x17   : > { %v396_v25 = vld [vmem:[%s2563_s21 + $0x40] sm:$0xff]  ;;  %v363_v26 = vld [vmem:[%s2569_s24 + $0x38] sm:$0xff]  ;;  %v397_v28 = vld [vmem:[%s2563_s21 + $0x48] sm:$0xff] }
  0x18   : > { %2094 = vmatmul.mubr.msk.f32.gmra.mrb[2].mxu1 %vm426_vm0, %v391_v15  ;;  %v364_v27 = vld [vmem:[%s2569_s24 + $0x40] sm:$0xff]  ;;  %v398_v29 = vld [vmem:[%s2563_s21 + $0x50] sm:$0xff]  ;;  %v365_v30 = vld [vmem:[%s2569_s24 + $0x48] sm:$0xff] }
  0x19   : > { %2096 = vmatprep.mubr.msk.f32.mxu1 %vm426_vm0, %v392_v17  ;;  %2150 = vmatmul.mubr.msk.f32.gmra.mrb[2].mxu0 %vm748_vm1, %v359_v18  ;;  %v366_v31 = vld [vmem:[%s2569_s24 + $0x50] sm:$0xff]  ;;  %v399_v32 = vld [vmem:[%s2563_s21 + $0x58] sm:$0xff]  ;;  %v400_v33 = vld [vmem:[%s2563_s21 + $0x60] sm:$0xff] }
  0x1a   : > { %2152 = vmatprep.mubr.msk.f32.mxu0 %vm748_vm1, %v360_v19  ;;  %v367_v34 = vld [vmem:[%s2569_s24 + $0x58] sm:$0xff]  ;;  %v368_v35 = vld [vmem:[%s2569_s24 + $0x60] sm:$0xff]  ;;  %v401_v36 = vld [vmem:[%s2563_s21 + $0x68] sm:$0xff] }
  0x1b   : > { %v402_v37 = vld [vmem:[%s2563_s21 + $0x70] sm:$0xff]  ;;  %v369_v38 = vld [vmem:[%s2569_s24 + $0x68] sm:$0xff]  ;;  %v403_v40 = vld [vmem:[%s2563_s21 + $0x78] sm:$0xff] }
  0x1c   : > { %2097 = vmatmul.mubr.msk.f32.gmra.mrb[4].mxu1 %vm426_vm0, %v393_v20  ;;  %v370_v39 = vld [vmem:[%s2569_s24 + $0x70] sm:$0xff]  ;;  %v404_v41 = vld [vmem:[%s2563_s21 + $0x80] sm:$0xff]  ;;  %v371_v42 = vld [vmem:[%s2569_s24 + $0x78] sm:$0xff] }
  0x1d   : > { %2099 = vmatprep.mubr.msk.f32.mxu1 %vm426_vm0, %v394_v21  ;;  %2153 = vmatmul.mubr.msk.f32.gmra.mrb[4].mxu0 %vm748_vm1, %v361_v22  ;;  %v372_v43 = vld [vmem:[%s2569_s24 + $0x80] sm:$0xff]  ;;  %v405_v44 = vld [vmem:[%s2563_s21 + $0x88] sm:$0xff]  ;;  %v406_v45 = vld [vmem:[%s2563_s21 + $0x90] sm:$0xff] }
  0x1e   : > { %2155 = vmatprep.mubr.msk.f32.mxu0 %vm748_vm1, %v362_v23  ;;  %v373_v46 = vld [vmem:[%s2569_s24 + $0x88] sm:$0xff]  ;;  %v374_v47 = vld [vmem:[%s2569_s24 + $0x90] sm:$0xff]  ;;  %v407_v48 = vld [vmem:[%s2563_s21 + $0x98] sm:$0xff] }
  0x1f   : > { %v408_v49 = vld [vmem:[%s2563_s21 + $0xa0] sm:$0xff]  ;;  %v375_v50 = vld [vmem:[%s2569_s24 + $0x98] sm:$0xff]  ;;  %v409_v52 = vld [vmem:[%s2563_s21 + $0xa8] sm:$0xff] }
  0x20   : > { %2100 = vmatmul.mubr.msk.f32.gmra.mrb[6].mxu1 %vm426_vm0, %v395_v24  ;;  %v376_v51 = vld [vmem:[%s2569_s24 + $0xa0] sm:$0xff]  ;;  %v410_v53 = vld [vmem:[%s2563_s21 + $0xb0] sm:$0xff]  ;;  %v377_v54 = vld [vmem:[%s2569_s24 + $0xa8] sm:$0xff] }
  0x21   : > { %2102 = vmatprep.mubr.msk.f32.mxu1 %vm426_vm0, %v396_v25  ;;  %2156 = vmatmul.mubr.msk.f32.gmra.mrb[6].mxu0 %vm748_vm1, %v363_v26  ;;  %v378_v55 = vld [vmem:[%s2569_s24 + $0xb0] sm:$0xff]  ;;  %v411_v56 = vld [vmem:[%s2563_s21 + $0xb8] sm:$0xff]  ;;  %v412_v57 = vld [vmem:[%s2563_s21 + $0xc0] sm:$0xff] }
  0x22   : > { %2158 = vmatprep.mubr.msk.f32.mxu0 %vm748_vm1, %v364_v27  ;;  %v379_v58 = vld [vmem:[%s2569_s24 + $0xb8] sm:$0xff]  ;;  %v380_v59 = vld [vmem:[%s2569_s24 + $0xc0] sm:$0xff]  ;;  %v413_v60 = vld [vmem:[%s2563_s21 + $0xc8] sm:$0xff] }
  0x23   : > { %v414_v61 = vld [vmem:[%s2563_s21 + $0xd0] sm:$0xff]  ;;  %v381_v62 = vld [vmem:[%s2569_s24 + $0xc8] sm:$0xff]  ;;  %v415_v0 = vld [vmem:[%s2563_s21 + $0xd8] sm:$0xff] }
  0x24   : > { %2103 = vmatmul.mubr.msk.f32.gmra.mrb[8].mxu1 %vm426_vm0, %v397_v28  ;;  %v382_v63 = vld [vmem:[%s2569_s24 + $0xd0] sm:$0xff]  ;;  %v416_v1 = vld [vmem:[%s2563_s21 + $0xe0] sm:$0xff]  ;;  %v383_v2 = vld [vmem:[%s2569_s24 + $0xd8] sm:$0xff] }
  0x25   : > { %2105 = vmatprep.mubr.msk.f32.mxu1 %vm426_vm0, %v398_v29  ;;  %2159 = vmatmul.mubr.msk.f32.gmra.mrb[8].mxu0 %vm748_vm1, %v365_v30  ;;  %v384_v3 = vld [vmem:[%s2569_s24 + $0xe0] sm:$0xff]  ;;  %v417_v4 = vld [vmem:[%s2563_s21 + $0xe8] sm:$0xff]  ;;  %v418_v5 = vld [vmem:[%s2563_s21 + $0xf0] sm:$0xff] }
  0x26   : > { %2161 = vmatprep.mubr.msk.f32.mxu0 %vm748_vm1, %v366_v31  ;;  %v385_v6 = vld [vmem:[%s2569_s24 + $0xe8] sm:$0xff]  ;;  %v386_v7 = vld [vmem:[%s2569_s24 + $0xf0] sm:$0xff]  ;;  %v419_v8 = vld [vmem:[%s2563_s21 + $0xf8] sm:$0xff] }
  0x27   : > { %v387_v9 = vld [vmem:[%s2569_s24 + $0xf8] sm:$0xff]  ;;  %v2702_v13 = vld [vmem:[%s3234_s4] ss:$0 sm:$0xff] }
  0x28   : > { %2106 = vmatmul.mubr.msk.f32.gmra.mrb[10].mxu1 %vm426_vm0, %v399_v32 }
  0x29   : > { %2108 = vmatprep.mubr.msk.f32.mxu1 %vm426_vm0, %v400_v33  ;;  %2162 = vmatmul.mubr.msk.f32.gmra.mrb[10].mxu0 %vm748_vm1, %v367_v34 }
  0x2a   : > { %2164 = vmatprep.mubr.msk.f32.mxu0 %vm748_vm1, %v368_v35 }
  0x2c   : > { %2109 = vmatmul.mubr.msk.f32.gmra.mrb[12].mxu1 %vm426_vm0, %v401_v36 }
  0x2d   : > { %2111 = vmatprep.mubr.msk.f32.mxu1 %vm426_vm0, %v402_v37  ;;  %2165 = vmatmul.mubr.msk.f32.gmra.mrb[12].mxu0 %vm748_vm1, %v369_v38 }
  0x2e   : > { %2167 = vmatprep.mubr.msk.f32.mxu0 %vm748_vm1, %v370_v39 }
  0x30   : > { %2112 = vmatmul.mubr.msk.f32.gmra.mrb[14].mxu1 %vm426_vm0, %v403_v40 }
  0x31   : > { %2114 = vmatprep.mubr.msk.f32.mxu1 %vm426_vm0, %v404_v41  ;;  %2168 = vmatmul.mubr.msk.f32.gmra.mrb[14].mxu0 %vm748_vm1, %v371_v42 }
  0x32   : > { %2170 = vmatprep.mubr.msk.f32.mxu0 %vm748_vm1, %v372_v43 }
  0x34   : > { %2115 = vmatmul.mubr.msk.f32.gmra.mrb[16].mxu1 %vm426_vm0, %v405_v44 }
  0x35   : > { %2117 = vmatprep.mubr.msk.f32.mxu1 %vm426_vm0, %v406_v45  ;;  %2171 = vmatmul.mubr.msk.f32.gmra.mrb[16].mxu0 %vm748_vm1, %v373_v46 }
  0x36   : > { %2173 = vmatprep.mubr.msk.f32.mxu0 %vm748_vm1, %v374_v47 }
  0x38   : > { %2118 = vmatmul.mubr.msk.f32.gmra.mrb[18].mxu1 %vm426_vm0, %v407_v48 }
  0x39   : > { %2120 = vmatprep.mubr.msk.f32.mxu1 %vm426_vm0, %v408_v49  ;;  %2174 = vmatmul.mubr.msk.f32.gmra.mrb[18].mxu0 %vm748_vm1, %v375_v50 }
  0x3a   : > { %2176 = vmatprep.mubr.msk.f32.mxu0 %vm748_vm1, %v376_v51 }
  0x3c   : > { %2121 = vmatmul.mubr.msk.f32.gmra.mrb[20].mxu1 %vm426_vm0, %v409_v52 }
  0x3d   : > { %2123 = vmatprep.mubr.msk.f32.mxu1 %vm426_vm0, %v410_v53  ;;  %2177 = vmatmul.mubr.msk.f32.gmra.mrb[20].mxu0 %vm748_vm1, %v377_v54 }
  0x3e   : > { %2179 = vmatprep.mubr.msk.f32.mxu0 %vm748_vm1, %v378_v55 }
  0x40   : > { %2124 = vmatmul.mubr.msk.f32.gmra.mrb[22].mxu1 %vm426_vm0, %v411_v56 }
  0x41   : > { %2126 = vmatprep.mubr.msk.f32.mxu1 %vm426_vm0, %v412_v57  ;;  %2180 = vmatmul.mubr.msk.f32.gmra.mrb[22].mxu0 %vm748_vm1, %v379_v58 }
  0x42   : > { %2182 = vmatprep.mubr.msk.f32.mxu0 %vm748_vm1, %v380_v59 }
  0x44   : > { %2127 = vmatmul.mubr.msk.f32.gmra.mrb[24].mxu1 %vm426_vm0, %v413_v60 }
  0x45   : > { %2129 = vmatprep.mubr.msk.f32.mxu1 %vm426_vm0, %v414_v61  ;;  %2183 = vmatmul.mubr.msk.f32.gmra.mrb[24].mxu0 %vm748_vm1, %v381_v62 }
  0x46   : > { %2185 = vmatprep.mubr.msk.f32.mxu0 %vm748_vm1, %v382_v63 }
  0x48   : > { %2130 = vmatmul.mubr.msk.f32.gmra.mrb[26].mxu1 %vm426_vm0, %v415_v0 }
  0x49   : > { %2132 = vmatprep.mubr.msk.f32.mxu1 %vm426_vm0, %v416_v1  ;;  %2186 = vmatmul.mubr.msk.f32.gmra.mrb[26].mxu0 %vm748_vm1, %v383_v2 }
  0x4a   : > { %2188 = vmatprep.mubr.msk.f32.mxu0 %vm748_vm1, %v384_v3 }
  0x4c   : > { %2133 = vmatmul.mubr.msk.f32.gmra.mrb[28].mxu1 %vm426_vm0, %v417_v4 }
  0x4d   : > { %2135 = vmatprep.mubr.msk.f32.mxu1 %vm426_vm0, %v418_v5  ;;  %2189 = vmatmul.mubr.msk.f32.gmra.mrb[28].mxu0 %vm748_vm1, %v385_v6 }
  0x4e   : > { %2191 = vmatprep.mubr.msk.f32.mxu0 %vm748_vm1, %v386_v7 }
  0x50   : > { %2136 = vmatmul.mubr.msk.f32.gmra.mrb[30].mxu1 %vm426_vm0, %v419_v8 }
  0x51   : > { %2192 = vmatmul.mubr.msk.f32.gmra.mrb[30].mxu0 %vm748_vm1, %v387_v9 }
  0xe7   : > { %v2092_v10 = vpop.f32.mrb[0].mxu1 }
  0xe8   : > { %v589_v11 = vpop.f32.mrb[1].mxu1  ;;  %v2148_v12 = vpop.f32.mrb[0].mxu0 }
  0xe9   : > { %v917_v14 = vadd.f32 %v2148_v12, %v2092_v10  ;;  %v911_v15 = vpop.f32.mrb[1].mxu0 }
  0xea   : > { %v912_v17 = vadd.f32 %v911_v15, %v589_v11 }
  0xeb   : > { %v2095_v16 = vpop.f32.mrb[2].mxu1  ;;  %v2705_v19 = vadd.f32 %v2702_v13, %v917_v14 }
  0xec   : > { %v599_v18 = vpop.f32.mrb[3].mxu1  ;;  %v2708_v20 = vadd.f32 %v2702_v13, %v912_v17  ;;  %v2151_v21 = vpop.f32.mrb[2].mxu0 }
  0xed   : > { %v1142_v22 = vmul.f32 0.044715, %v2705_v19  ;;  %v927_v23 = vadd.f32 %v2151_v21, %v2095_v16  ;;  %v921_v24 = vpop.f32.mrb[3].mxu0 }
  0xee   : > { %v1141_v26 = vmul.f32 0.044715, %v2708_v20  ;;  %v922_v27 = vadd.f32 %v921_v24, %v599_v18  ;;  %v1110_v18 = vmul.f32 0.5, %v2705_v19 }
  0xef   : > { %v2098_v25 = vpop.f32.mrb[4].mxu1  ;;  %v2713_v29 = vadd.f32 %v2702_v13, %v927_v23  ;;  %v1174_v30 = vmul.f32 %v1142_v22, %v2705_v19 }
  0xf0   : > { %v609_v28 = vpop.f32.mrb[5].mxu1  ;;  %v2717_v31 = vadd.f32 %v2702_v13, %v922_v27  ;;  %v2154_v32 = vpop.f32.mrb[4].mxu0  ;;  %v1173_v33 = vmul.f32 %v1141_v26, %v2708_v20 }
  0xf1   : > { %v1144_v34 = vmul.f32 0.044715, %v2713_v29  ;;  %v937_v35 = vadd.f32 %v2154_v32, %v2098_v25  ;;  %v931_v36 = vpop.f32.mrb[5].mxu0  ;;  %v1206_v38 = vmul.f32 %v1174_v30, %v2705_v19  ;;  %v1109_v25 = vmul.f32 0.5, %v2708_v20 }
  0xf2   : > { %v1143_v39 = vmul.f32 0.044715, %v2717_v31  ;;  %v932_v40 = vadd.f32 %v931_v36, %v609_v28  ;;  %v1205_v42 = vmul.f32 %v1173_v33, %v2708_v20  ;;  %v1112_v33 = vmul.f32 0.5, %v2713_v29 }
  0xf3   : > { %v2101_v37 = vpop.f32.mrb[6].mxu1  ;;  %v2725_v43 = vadd.f32 %v2702_v13, %v937_v35  ;;  %v1238_v44 = vadd.f32 %v1206_v38, %v2705_v19  ;;  %v1176_v45 = vmul.f32 %v1144_v34, %v2713_v29 }
  0xf4   : > { %v619_v41 = vpop.f32.mrb[7].mxu1  ;;  %v1081_v46 = vadd.f32 %v2702_v13, %v932_v40  ;;  %v2157_v47 = vpop.f32.mrb[6].mxu0  ;;  %v1237_v48 = vadd.f32 %v1205_v42, %v2708_v20  ;;  %v1175_v49 = vmul.f32 %v1143_v39, %v2717_v31  ;;  %v1111_v20 = vmul.f32 0.5, %v2717_v31 }
  0xf5   : > { %v1146_v50 = vmul.f32 0.044715, %v2725_v43  ;;  %v947_v51 = vadd.f32 %v2157_v47, %v2101_v37  ;;  %v941_v52 = vpop.f32.mrb[7].mxu0  ;;  %v1270_v54 = vmul.f32 0.7978846, %v1238_v44  ;;  %v1208_v55 = vmul.f32 %v1176_v45, %v2713_v29 }
  0xf6   : > { %v1145_v56 = vmul.f32 0.044715, %v1081_v46  ;;  %v942_v57 = vadd.f32 %v941_v52, %v619_v41  ;;  %v1269_v59 = vmul.f32 0.7978846, %v1237_v48  ;;  %v1207_v60 = vmul.f32 %v1175_v49, %v2717_v31 }
  0xf7   : > { %v2104_v53 = vpop.f32.mrb[8].mxu1  ;;  %v2736_v61 = vadd.f32 %v2702_v13, %v947_v51  ;;  %2262 = vtanh.f32 %v1270_v54  ;;  %v1240_v62 = vadd.f32 %v1208_v55, %v2713_v29  ;;  %v1178_v7 = vmul.f32 %v1146_v50, %v2725_v43 }
  0xf8   : > { %v629_v58 = vpop.f32.mrb[9].mxu1  ;;  %v1083_v63 = vadd.f32 %v2702_v13, %v942_v57  ;;  %v2160_v0 = vpop.f32.mrb[8].mxu0  ;;  %2264 = vtanh.f32 %v1269_v59  ;;  %v1239_v1 = vadd.f32 %v1207_v60, %v2717_v31  ;;  %v1177_v2 = vmul.f32 %v1145_v56, %v1081_v46  ;;  %v2766_v31 = vld [vmem:[%s3235_s5] ss:$0 sm:$0xff] }
  0xf9   : > { %v957_v3 = vadd.f32 %v2160_v0, %v2104_v53  ;;  %v951_v4 = vpop.f32.mrb[9].mxu0  ;;  %v1272_v6 = vmul.f32 0.7978846, %v1240_v62  ;;  %v1148_v14 = vmul.f32 0.044715, %v2736_v61  ;;  %v1210_v15 = vmul.f32 %v1178_v7, %v2725_v43 }
  0xfa   : > { %v1147_v8 = vmul.f32 0.044715, %v1083_v63  ;;  %v952_v9 = vadd.f32 %v951_v4, %v629_v58  ;;  %v1271_v11 = vmul.f32 0.7978846, %v1239_v1  ;;  %v1209_v12 = vmul.f32 %v1177_v2, %v1081_v46 }
  0xfb   : > { %v2107_v5 = vpop.f32.mrb[10].mxu1  ;;  %2266 = vtanh.f32 %v1272_v6  ;;  %v1242_v26 = vadd.f32 %v1210_v15, %v2725_v43  ;;  %v2753_v35 = vadd.f32 %v2702_v13, %v957_v3  ;;  %v1180_v37 = vmul.f32 %v1148_v14, %v2736_v61 }
  0xfc   : > { %v639_v10 = vpop.f32.mrb[11].mxu1  ;;  %v2745_v16 = vadd.f32 %v2702_v13, %v952_v9  ;;  %v2163_v17 = vpop.f32.mrb[10].mxu0  ;;  %2268 = vtanh.f32 %v1271_v11  ;;  %v1241_v21 = vadd.f32 %v1209_v12, %v1081_v46  ;;  %v1179_v27 = vmul.f32 %v1147_v8, %v1083_v63 }
  0xfd   : > { %v967_v22 = vadd.f32 %v2163_v17, %v2107_v5  ;;  %v961_v23 = vpop.f32.mrb[11].mxu0  ;;  %v1274_v19 = vmul.f32 0.7978846, %v1242_v26  ;;  %v2757_v39 = vmul.f32 0.5, %v1081_v46  ;;  %v2761_v45 = vmul.f32 0.5, %v2725_v43 }
  0xfe   : > { %v1149_v28 = vmul.f32 0.044715, %v2745_v16  ;;  %v962_v30 = vadd.f32 %v961_v23, %v639_v10  ;;  %v1273_v34 = vmul.f32 0.7978846, %v1241_v21  ;;  %v1211_v36 = vmul.f32 %v1179_v27, %v1083_v63 }
  0xff   : > { %v2110_v24 = vpop.f32.mrb[12].mxu1  ;;  %v2768_v46 = vmul.f32 0.5, %v1083_v63  ;;  %v1212_v52 = vmul.f32 %v1180_v37, %v2736_v61  ;;  %v1150_v53 = vmul.f32 0.044715, %v2753_v35  ;;  %v2773_v43 = vadd.f32 %v2702_v13, %v967_v22 }
 0x100   : > { %v649_v32 = vpop.f32.mrb[13].mxu1  ;;  %v2166_v38 = vpop.f32.mrb[12].mxu0  ;;  %2270 = vtanh.f32 %v1273_v34  ;;  %v1181_v40 = vmul.f32 %v1149_v28, %v2745_v16  ;;  %v1243_v47 = vadd.f32 %v1211_v36, %v1083_v63  ;;  %v2776_v56 = vadd.f32 %v2702_v13, %v962_v30 }
 0x101   : > { %v2263_v41 = vpop.eup %2262  ;;  %v977_v42 = vadd.f32 %v2166_v38, %v2110_v24  ;;  %v971_v44 = vpop.f32.mrb[13].mxu0  ;;  %2272 = vtanh.f32 %v1274_v19  ;;  %v1244_v59 = vadd.f32 %v1212_v52, %v2736_v61  ;;  %v2781_v3 = vmul.f32 0.5, %v2736_v61 }
 0x102   : > { %v2265_v48 = vpop.eup %2264  ;;  %v972_v49 = vadd.f32 %v971_v44, %v649_v32  ;;  %v1334_v51 = vadd.f32 1.0, %v2263_v41  ;;  %v1275_v55 = vmul.f32 0.7978846, %v1243_v47  ;;  %v1213_v60 = vmul.f32 %v1181_v40, %v2745_v16 }
 0x103   : > { %v2113_v29 = vpop.f32.mrb[14].mxu1  ;;  %v1333_v54 = vadd.f32 1.0, %v2265_v48  ;;  %v2785_v9 = vmul.f32 0.5, %v2745_v16  ;;  %v2788_v10 = vmul.f32 0.044715, %v2773_v43  ;;  %v2795_v22 = vadd.f32 %v2702_v13, %v977_v42 }
 0x104   : > { %v659_v50 = vpop.f32.mrb[15].mxu1  ;;  %v2169_v57 = vpop.f32.mrb[14].mxu0  ;;  %v1366_v58 = vmul.f32 %v1334_v51, %v1110_v18  ;;  %2274 = vtanh.f32 %v1275_v55  ;;  %v1276_v14 = vmul.f32 0.7978846, %v1244_v59  ;;  %v1151_v15 = vmul.f32 0.044715, %v2776_v56 }
 0x105   : > { %v2267_v62 = vpop.eup %2266  ;;  %v987_v63 = vadd.f32 %v2169_v57, %v2113_v29  ;;  %v981_v0 = vpop.f32.mrb[15].mxu0  ;;  %v1365_v2 = vmul.f32 %v1333_v54, %v1109_v25  ;;  %v1245_v21 = vadd.f32 %v1213_v60, %v2745_v16  ;;  %v2798_v23 = vadd.f32 %v2702_v13, %v972_v49 }
 0x106   : > { %v2269_v4 = vpop.eup %2268  ;;  %v982_v5 = vadd.f32 %v981_v0, %v659_v50  ;;  %v1405_v7 = vmul.f32 %v2766_v31, %v1366_v58  ;;  %v1336_v8 = vadd.f32 1.0, %v2267_v62  ;;  %2276 = vtanh.f32 %v1276_v14 }
 0x107   : > { %v2116_v1 = vpop.f32.mrb[16].mxu1  ;;  %v1404_v11 = vmul.f32 %v2766_v31, %v1365_v2  ;;  %v1335_v12 = vadd.f32 1.0, %v2269_v4  ;;  %v2805_v19 = vadd.f32 %v2702_v13, %v987_v63  ;;  %v1277_v38 = vmul.f32 0.7978846, %v1245_v21 }
 0x108   : > { %v669_v6 = vpop.f32.mrb[17].mxu1  ;;  %v2172_v61 = vpop.f32.mrb[16].mxu0  ;;  %v1439_v17 = vsel %vm748_vm1, %v1405_v7, 0.0  ;;  %v1368_v18 = vmul.f32 %v1336_v8, %v1112_v33  ;;  %v2802_v33 = vmul.f32 0.5, %v2753_v35  ;;  %v1182_v44 = vmul.f32 %v1150_v53, %v2753_v35 }
 0x109   : > { %v997_v24 = vadd.f32 %v2172_v61, %v2116_v1  ;;  %1440 = vadd.xlane.f32.xlu0 %v1439_v17  ;;  %v991_v25 = vpop.f32.mrb[17].mxu0  ;;  %v1367_v27 = vmul.f32 %v1335_v12, %v1111_v20  ;;  %v1436_v36 = vsel %vm748_vm1, %v1404_v11, 0.0  ;;  %v2812_v29 = vmul.f32 0.044715, %v2795_v22 }
 0x10a   : > { %v2271_v28 = vpop.eup %2270  ;;  %v992_v30 = vadd.f32 %v991_v25, %v669_v6  ;;  %v1407_v34 = vmul.f32 %v2766_v31, %v1368_v18  ;;  %v2815_v47 = vadd.f32 %v2702_v13, %v982_v5  ;;  %2278 = vtanh.f32 %v1277_v38 }
 0x10b   : > { %v2119_v26 = vpop.f32.mrb[18].mxu1  ;;  %v2273_v16 = vpop.eup %2272  ;;  %v1337_v37 = vadd.f32 1.0, %v2271_v28  ;;  %v1406_v41 = vmul.f32 %v2766_v31, %v1367_v27  ;;  %v2819_v52 = vadd.f32 %v2702_v13, %v997_v24  ;;  %v1153_v58 = vmul.f32 0.044715, %v2798_v23 }
 0x10c   : > { %v679_v32 = vpop.f32.mrb[19].mxu1  ;;  %v2175_v40 = vpop.f32.mrb[18].mxu0  ;;  %v1445_v20 = vsel %vm748_vm1, %v1407_v34, 0.0  ;;  %v1338_v42 = vadd.f32 1.0, %v2273_v16  ;;  %v2824_v59 = vadd.f32 %v2702_v13, %v992_v30  ;;  %v1214_v62 = vmul.f32 %v1182_v44, %v2753_v35 }
 0x10d   : > { %v1007_v48 = vadd.f32 %v2175_v40, %v2119_v26  ;;  %1446 = vadd.xlane.f32.xlu1 %v1445_v20  ;;  %v1001_v49 = vpop.f32.mrb[19].mxu0  ;;  %1437 = vadd.xlane.f32.xlu0 %v1436_v36  ;;  %v1369_v51 = vmul.f32 %v1337_v37, %v2757_v39  ;;  %v1442_v39 = vsel %vm748_vm1, %v1406_v41, 0.0  ;;  %v1183_v2 = vmul.f32 %v1151_v15, %v2776_v56 }
 0x10e   : > { %v1002_v54 = vadd.f32 %v1001_v49, %v679_v32  ;;  %v1370_v53 = vmul.f32 %v1338_v42, %v2761_v45  ;;  %v2275_v57 = vpop.eup %2274  ;;  %v2832_v45 = vmul.f32 0.044715, %v2805_v19  ;;  %v1246_v8 = vadd.f32 %v1214_v62, %v2753_v35 }
 0x10f   : > { %v2122_v50 = vpop.f32.mrb[20].mxu1  ;;  %v1408_v60 = vmul.f32 %v2766_v31, %v1369_v51  ;;  %v1339_v1 = vadd.f32 1.0, %v2275_v57  ;;  %v2837_v11 = vmul.f32 0.044715, %v2815_v47  ;;  %v2840_v12 = vmul.f32 0.044715, %v2819_v52 }
 0x110   : > { %v689_v55 = vpop.f32.mrb[21].mxu1  ;;  %v2178_v63 = vpop.f32.mrb[20].mxu0  ;;  %v1409_v0 = vmul.f32 %v2766_v31, %v1370_v53  ;;  %v2844_v17 = vmul.f32 0.044715, %v2824_v59  ;;  %v1278_v21 = vmul.f32 0.7978846, %v1246_v8  ;;  %v1215_v35 = vmul.f32 %v1183_v2, %v2776_v56 }
 0x111   : > { %v1017_v4 = vadd.f32 %v2178_v63, %v2122_v50  ;;  %v1011_v5 = vpop.f32.mrb[21].mxu0  ;;  %1443 = vadd.xlane.f32.xlu1 %v1442_v39  ;;  %v1448_v6 = vsel %vm748_vm1, %v1408_v60, 0.0  ;;  %v1371_v61 = vmul.f32 %v1339_v1, %v2768_v46  ;;  %v2277_v24 = vpop.eup %2276  ;;  %v1184_v46 = vmul.f32 %v2788_v10, %v2773_v43 }
 0x112   : > { %v1012_v14 = vadd.f32 %v1011_v5, %v689_v55  ;;  %1449 = vadd.xlane.f32.xlu0 %v1448_v6  ;;  %v1451_v27 = vsel %vm748_vm1, %v1409_v0, 0.0  ;;  %v2858_v30 = vadd.f32 %v2702_v13, %v1007_v48  ;;  %v1340_v36 = vadd.f32 1.0, %v2277_v24 }
 0x113   : > { %v2125_v7 = vpop.f32.mrb[22].mxu1  ;;  %v2847_v18 = vadd.f32 %v2702_v13, %v1017_v4  ;;  %v1410_v28 = vmul.f32 %v2766_v31, %v1371_v61  ;;  %2280 = vtanh.f32 %v1278_v21  ;;  %v2861_v37 = vadd.f32 %v2702_v13, %v1002_v54 }
 0x114   : > { %v699_v15 = vpop.f32.mrb[23].mxu1  ;;  %v2851_v25 = vadd.f32 %v2702_v13, %v1012_v14  ;;  %v2181_v26 = vpop.f32.mrb[22].mxu0  ;;  %v1247_v41 = vadd.f32 %v1215_v35, %v2776_v56  ;;  %v1372_v42 = vmul.f32 %v1340_v36, %v2781_v3  ;;  %v1216_v44 = vmul.f32 %v1184_v46, %v2773_v43 }
 0x115   : > { %v1027_v32 = vadd.f32 %v2181_v26, %v2125_v7  ;;  %v1021_v34 = vpop.f32.mrb[23].mxu0  ;;  %1452 = vadd.xlane.f32.xlu1 %v1451_v27  ;;  %v1454_v40 = vsel %vm748_vm1, %v1410_v28, 0.0  ;;  %v1185_v48 = vmul.f32 %v1153_v58, %v2798_v23  ;;  %v2279_v49 = vpop.eup %2278  ;;  %v2875_v54 = vmul.f32 0.5, %v2776_v56 }
 0x116   : > { %v1022_v38 = vadd.f32 %v1021_v34, %v699_v15  ;;  %1455 = vadd.xlane.f32.xlu0 %v1454_v40  ;;  %v1279_v55 = vmul.f32 0.7978846, %v1247_v41  ;;  %v1186_v53 = vmul.f32 %v2812_v29, %v2795_v22  ;;  %v2880_v57 = vmul.f32 0.044715, %v2858_v30 }
 0x117   : > { %v2128_v16 = vpop.f32.mrb[24].mxu1  ;;  %v2866_v10 = vadd.f32 %v2702_v13, %v1027_v32  ;;  %v1411_v62 = vmul.f32 %v2766_v31, %v1372_v42  ;;  %v1341_v58 = vadd.f32 1.0, %v2279_v49  ;;  %v2884_v39 = vmul.f32 0.044715, %v2861_v37 }
 0x118   : > { %v709_v20 = vpop.f32.mrb[25].mxu1  ;;  %v2872_v50 = vadd.f32 %v2702_v13, %v1022_v38  ;;  %v2184_v51 = vpop.f32.mrb[24].mxu0  ;;  %2282 = vtanh.f32 %v1279_v55  ;;  %v1248_v56 = vadd.f32 %v1216_v44, %v2773_v43  ;;  %v1217_v5 = vmul.f32 %v1185_v48, %v2798_v23 }
 0x119   : > { %v1037_v3 = vadd.f32 %v2184_v51, %v2128_v16  ;;  %v1031_v60 = vpop.f32.mrb[25].mxu0  ;;  %v1457_v29 = vsel %vm748_vm1, %v1411_v62, 0.0  ;;  %v1373_v4 = vmul.f32 %v1341_v58, %v2785_v9  ;;  %v2897_v8 = vmul.f32 0.5, %v2773_v43 }
 0x11a   : > { %v1032_v0 = vadd.f32 %v1031_v60, %v709_v20  ;;  %1458 = vadd.xlane.f32.xlu1 %v1457_v29  ;;  %v1280_v14 = vmul.f32 0.7978846, %v1248_v56  ;;  %v1218_v15 = vmul.f32 %v1186_v53, %v2795_v22  ;;  %v2902_v9 = vmul.f32 0.5, %v2798_v23 }
 0x11b   : > { %v2131_v63 = vpop.f32.mrb[26].mxu1  ;;  %v2888_v2 = vadd.f32 %v2702_v13, %v1037_v3  ;;  %v1412_v61 = vmul.f32 %v2766_v31, %v1373_v4  ;;  %v1249_v26 = vadd.f32 %v1217_v5, %v2798_v23  ;;  %v2906_v27 = vmul.f32 0.044715, %v2847_v18 }
 0x11c   : > { %v719_v1 = vpop.f32.mrb[27].mxu1  ;;  %v2894_v6 = vadd.f32 %v2702_v13, %v1032_v0  ;;  %v2187_v7 = vpop.f32.mrb[26].mxu0  ;;  %2284 = vtanh.f32 %v1280_v14  ;;  %v1250_v43 = vadd.f32 %v1218_v15, %v2795_v22  ;;  %v1187_v38 = vmul.f32 %v2837_v11, %v2815_v47 }
 0x11d   : > { %v1047_v21 = vadd.f32 %v2187_v7, %v2131_v63  ;;  %v1041_v35 = vpop.f32.mrb[27].mxu0  ;;  %v2281_v32 = vpop.eup %2280  ;;  %v1460_v34 = vsel %vm748_vm1, %v1412_v61, 0.0  ;;  %v1281_v36 = vmul.f32 0.7978846, %v1249_v26  ;;  %v2916_v23 = vmul.f32 0.044715, %v2851_v25 }
 0x11e   : > { %v1042_v28 = vadd.f32 %v1041_v35, %v719_v1  ;;  %1461 = vadd.xlane.f32.xlu0 %v1460_v34  ;;  %v1342_v20 = vadd.f32 1.0, %v2281_v32  ;;  %v1282_v42 = vmul.f32 0.7978846, %v1250_v43  ;;  %v2922_v51 = vmul.f32 0.5, %v2795_v22 }
 0x11f   : > { %v2134_v24 = vpop.f32.mrb[28].mxu1  ;;  %v2911_v16 = vadd.f32 %v2702_v13, %v1047_v21  ;;  %2286 = vtanh.f32 %v1281_v36  ;;  %v1219_v55 = vmul.f32 %v1187_v38, %v2815_v47  ;;  %v2926_v11 = vmul.f32 0.044715, %v2866_v10 }
 0x120   : > { %v729_v46 = vpop.f32.mrb[29].mxu1  ;;  %v2919_v40 = vadd.f32 %v2702_v13, %v1042_v28  ;;  %v2190_v41 = vpop.f32.mrb[28].mxu0  ;;  %v1374_v53 = vmul.f32 %v1342_v20, %v2802_v33  ;;  %2288 = vtanh.f32 %v1282_v42  ;;  %v2930_v62 = vmul.f32 0.044715, %v2872_v50 }
 0x121   : > { %v1057_v44 = vadd.f32 %v2190_v41, %v2134_v24  ;;  %v1051_v48 = vpop.f32.mrb[29].mxu0  ;;  %v1251_v63 = vadd.f32 %v1219_v55, %v2815_v47  ;;  %v1188_v22 = vmul.f32 %v2832_v45, %v2805_v19  ;;  %v2943_v29 = vmul.f32 0.5, %v2815_v47 }
 0x122   : > { %v1052_v3 = vadd.f32 %v1051_v48, %v729_v46  ;;  %v2283_v0 = vpop.eup %2282  ;;  %v1413_v1 = vmul.f32 %v2766_v31, %v1374_v53  ;;  %v1189_v4 = vmul.f32 %v2844_v17, %v2824_v59  ;;  %v2948_v5 = vmul.f32 0.044715, %v2888_v2 }
 0x123   : > { %v2137_v49 = vpop.f32.mrb[30].mxu1  ;;  %v2933_v58 = vadd.f32 %v2702_v13, %v1057_v44  ;;  %v1343_v7 = vadd.f32 1.0, %v2283_v0  ;;  %v1283_v45 = vmul.f32 0.7978846, %v1251_v63  ;;  %v2951_v61 = vmul.f32 0.044715, %v2894_v6 }
 0x124   : > { %v739_v60 = vpop.f32.mrb[31].mxu1  ;;  %v2940_v56 = vadd.f32 %v2702_v13, %v1052_v3  ;;  %v2193_v33 = vpop.f32.mrb[30].mxu0  ;;  %v1463_v21 = vsel %vm748_vm1, %v1413_v1, 0.0  ;;  %v1220_v24 = vmul.f32 %v1188_v22, %v2805_v19  ;;  %v1221_v26 = vmul.f32 %v1189_v4, %v2824_v59 }
 0x125   : > { %v1067_v14 = vadd.f32 %v2193_v33, %v2137_v49  ;;  %v1061_v15 = vpop.f32.mrb[31].mxu0  ;;  %1464 = vadd.xlane.f32.xlu1 %v1463_v21  ;;  %v1375_v47 = vmul.f32 %v1343_v7, %v2875_v54  ;;  %2290 = vtanh.f32 %v1283_v45  ;;  %v2964_v43 = vmul.f32 0.5, %v2805_v19 }
 0x126   : > { %v1062_v35 = vadd.f32 %v1061_v15, %v739_v60  ;;  %v2285_v28 = vpop.eup %2284  ;;  %v1252_v32 = vadd.f32 %v1220_v24, %v2805_v19  ;;  %v1190_v34 = vmul.f32 %v2840_v12, %v2819_v52  ;;  %v2970_v54 = vmul.f32 0.044715, %v2911_v16 }
 0x127   : > { %v2957_v17 = vadd.f32 %v2702_v13, %v1067_v14  ;;  %v1414_v36 = vmul.f32 %v2766_v31, %v1375_v47  ;;  %v1344_v38 = vadd.f32 1.0, %v2285_v28  ;;  %v1253_v20 = vadd.f32 %v1221_v26, %v2824_v59 }
 0x128   : > { %v2961_v46 = vadd.f32 %v2702_v13, %v1062_v35  ;;  %v2975_v41 = vmul.f32 0.044715, %v2919_v40  ;;  %v1284_v13 = vmul.f32 0.7978846, %v1252_v32  ;;  %v1222_v42 = vmul.f32 %v1190_v34, %v2819_v52 }
 0x129   : > { %v1191_v19 = vmul.f32 %v2884_v39, %v2861_v37  ;;  %v2287_v44 = vpop.eup %2286  ;;  %v1466_v12 = vsel %vm748_vm1, %v1414_v36, 0.0  ;;  %v1376_v48 = vmul.f32 %v1344_v38, %v2897_v8  ;;  %v2983_v49 = vmul.f32 0.5, %v2824_v59 }
 0x12a   : > { %v1285_v55 = vmul.f32 0.7978846, %v1253_v20  ;;  %v2289_v53 = vpop.eup %2288  ;;  %1467 = vadd.xlane.f32.xlu0 %v1466_v12  ;;  %v1345_v3 = vadd.f32 1.0, %v2287_v44  ;;  %2292 = vtanh.f32 %v1284_v13  ;;  %v1254_v60 = vadd.f32 %v1222_v42, %v2819_v52 }
 0x12b   : > { %v1223_v63 = vmul.f32 %v1191_v19, %v2861_v37  ;;  %v1415_v22 = vmul.f32 %v2766_v31, %v1376_v48  ;;  %v1346_v39 = vadd.f32 1.0, %v2289_v53  ;;  %v1192_v0 = vmul.f32 %v2880_v57, %v2858_v30 }
 0x12c   : > { %2294 = vtanh.f32 %v1285_v55  ;;  %v1377_v8 = vmul.f32 %v1345_v3, %v2902_v9  ;;  %v2992_v59 = vmul.f32 0.5, %v2819_v52  ;;  %v1286_v1 = vmul.f32 0.7978846, %v1254_v60 }
 0x12d   : > { %v1255_v33 = vadd.f32 %v1223_v63, %v2861_v37  ;;  %v1469_v4 = vsel %vm748_vm1, %v1415_v22, 0.0  ;;  %v1378_v7 = vmul.f32 %v1346_v39, %v2922_v51  ;;  %v1224_v14 = vmul.f32 %v1192_v0, %v2858_v30 }
 0x12e   : > { %v1193_v15 = vmul.f32 %v2916_v23, %v2851_v25  ;;  %v3001_v45 = vmul.f32 0.044715, %v2933_v58  ;;  %1470 = vadd.xlane.f32.xlu1 %v1469_v4  ;;  %v1416_v57 = vmul.f32 %v2766_v31, %v1377_v8  ;;  %2296 = vtanh.f32 %v1286_v1 }
 0x12f   : > { %v1287_v52 = vmul.f32 0.7978846, %v1255_v33  ;;  %v2291_v9 = vpop.eup %2290  ;;  %v1417_v21 = vmul.f32 %v2766_v31, %v1378_v7  ;;  %v1256_v35 = vadd.f32 %v1224_v14, %v2858_v30  ;;  %v1194_v24 = vmul.f32 %v2906_v27, %v2847_v18 }
 0x130   : > { %v1225_v51 = vmul.f32 %v1193_v15, %v2851_v25  ;;  %v3010_v23 = vmul.f32 0.044715, %v2940_v56  ;;  %v1472_v47 = vsel %vm748_vm1, %v1416_v57, 0.0  ;;  %v1347_v26 = vadd.f32 1.0, %v2291_v9 }
 0x131   : > { %2298 = vtanh.f32 %v1287_v52  ;;  %1473 = vadd.xlane.f32.xlu0 %v1472_v47  ;;  %v1475_v28 = vsel %vm748_vm1, %v1417_v21, 0.0  ;;  %v1288_v32 = vmul.f32 0.7978846, %v1256_v35  ;;  %v1226_v36 = vmul.f32 %v1194_v24, %v2847_v18 }
 0x132   : > { %v1257_v34 = vadd.f32 %v1225_v51, %v2851_v25  ;;  %1476 = vadd.xlane.f32.xlu1 %v1475_v28  ;;  %v1379_v38 = vmul.f32 %v1347_v26, %v2943_v29  ;;  %v1127_v27 = vmul.f32 0.5, %v2861_v37  ;;  %v1195_v20 = vmul.f32 %v2930_v62, %v2872_v50 }
 0x133   : > { %v1196_v13 = vmul.f32 %v2926_v11, %v2866_v10  ;;  %v3023_v42 = vmul.f32 0.044715, %v2957_v17  ;;  %2300 = vtanh.f32 %v1288_v32  ;;  %v1258_v44 = vadd.f32 %v1226_v36, %v2847_v18 }
 0x134   : > { %v1289_v19 = vmul.f32 0.7978846, %v1257_v34  ;;  %v2293_v12 = vpop.eup %2292  ;;  %v1418_v48 = vmul.f32 %v2766_v31, %v1379_v38  ;;  %v1227_v29 = vmul.f32 %v1195_v20, %v2872_v50  ;;  %v1197_v62 = vmul.f32 %v2951_v61, %v2894_v6 }
 0x135   : > { %v1228_v37 = vmul.f32 %v1196_v13, %v2866_v10  ;;  %v3032_v11 = vmul.f32 0.044715, %v2961_v46  ;;  %v1348_v53 = vadd.f32 1.0, %v2293_v12  ;;  %v1290_v3 = vmul.f32 0.7978846, %v1258_v44 }
 0x136   : > { %v2295_v55 = vpop.eup %2294  ;;  %2302 = vtanh.f32 %v1289_v19  ;;  %v1478_v60 = vsel %vm748_vm1, %v1418_v48, 0.0  ;;  %v1259_v22 = vadd.f32 %v1227_v29, %v2872_v50  ;;  %v1229_v61 = vmul.f32 %v1197_v62, %v2894_v6 }
 0x137   : > { %v1349_v63 = vadd.f32 1.0, %v2295_v55  ;;  %v1260_v39 = vadd.f32 %v1228_v37, %v2866_v10  ;;  %1479 = vadd.xlane.f32.xlu0 %v1478_v60  ;;  %v1380_v0 = vmul.f32 %v1348_v53, %v2964_v43  ;;  %2304 = vtanh.f32 %v1290_v3 }
 0x138   : > { %v1198_v8 = vmul.f32 %v2948_v5, %v2888_v2  ;;  %v2297_v1 = vpop.eup %2296  ;;  %v1128_v4 = vmul.f32 0.5, %v2858_v30  ;;  %v1291_v7 = vmul.f32 0.7978846, %v1259_v22  ;;  %v1261_v52 = vadd.f32 %v1229_v61, %v2894_v6 }
 0x139   : > { %v1381_v33 = vmul.f32 %v1349_v63, %v2983_v49  ;;  %v1292_v14 = vmul.f32 0.7978846, %v1260_v39  ;;  %v1419_v15 = vmul.f32 %v2766_v31, %v1380_v0  ;;  %v1350_v57 = vadd.f32 1.0, %v2297_v1 }
 0x13a   : > { %v1230_v43 = vmul.f32 %v1198_v8, %v2888_v2  ;;  %v1129_v35 = vmul.f32 0.5, %v2851_v25  ;;  %2306 = vtanh.f32 %v1291_v7  ;;  %v1199_v5 = vmul.f32 %v2975_v41, %v2919_v40 }
 0x13b   : > { %v2299_v9 = vpop.eup %2298  ;;  %v1420_v21 = vmul.f32 %v2766_v31, %v1381_v33  ;;  %v1481_v30 = vsel %vm748_vm1, %v1419_v15, 0.0  ;;  %v1382_v49 = vmul.f32 %v1350_v57, %v2992_v59  ;;  %2308 = vtanh.f32 %v1292_v14 }
 0x13c   : > { %v1351_v51 = vadd.f32 1.0, %v2299_v9  ;;  %1482 = vadd.xlane.f32.xlu1 %v1481_v30  ;;  %v1293_v47 = vmul.f32 0.7978846, %v1261_v52  ;;  %v1262_v26 = vadd.f32 %v1230_v43, %v2888_v2  ;;  %v1231_v28 = vmul.f32 %v1199_v5, %v2919_v40 }
 0x13d   : > { %v1484_v24 = vsel %vm748_vm1, %v1420_v21, 0.0  ;;  %v2301_v32 = vpop.eup %2300  ;;  %v1421_v25 = vmul.f32 %v2766_v31, %v1382_v49  ;;  %v1130_v41 = vmul.f32 0.5, %v2847_v18  ;;  %v1200_v59 = vmul.f32 %v2970_v54, %v2911_v16 }
 0x13e   : > { %1485 = vadd.xlane.f32.xlu0 %v1484_v24  ;;  %v1383_v34 = vmul.f32 %v1351_v51, %v1127_v27  ;;  %v1352_v36 = vadd.f32 1.0, %v2301_v32  ;;  %2310 = vtanh.f32 %v1293_v47  ;;  %v1294_v38 = vmul.f32 0.7978846, %v1262_v26 }
 0x13f   : > { %v1263_v20 = vadd.f32 %v1231_v28, %v2919_v40  ;;  %v1487_v19 = vsel %vm748_vm1, %v1421_v25, 0.0  ;;  %v1232_v12 = vmul.f32 %v1200_v59, %v2911_v16  ;;  %v1201_v27 = vmul.f32 %v3010_v23, %v2940_v56 }
 0x140   : > { %v2303_v13 = vpop.eup %2302  ;;  %v1422_v44 = vmul.f32 %v2766_v31, %v1383_v34  ;;  %1488 = vadd.xlane.f32.xlu1 %v1487_v19  ;;  %v1384_v18 = vmul.f32 %v1352_v36, %v1128_v4  ;;  %2312 = vtanh.f32 %v1294_v38  ;;  %v1131_v62 = vmul.f32 0.5, %v2872_v50 }
 0x141   : > { %v1353_v48 = vadd.f32 1.0, %v2303_v13  ;;  %v1295_v54 = vmul.f32 0.7978846, %v1263_v20  ;;  %v2305_v29 = vpop.eup %2304  ;;  %v1264_v55 = vadd.f32 %v1232_v12, %v2911_v16  ;;  %v1233_v53 = vmul.f32 %v1201_v27, %v2940_v56 }
 0x142   : > { %v1490_v37 = vsel %vm748_vm1, %v1422_v44, 0.0  ;;  %v1423_v3 = vmul.f32 %v2766_v31, %v1384_v18  ;;  %v1354_v63 = vadd.f32 1.0, %v2305_v29  ;;  %v1132_v23 = vmul.f32 0.5, %v2866_v10 }
 0x143   : > { %1491 = vadd.xlane.f32.xlu0 %v1490_v37  ;;  %v1385_v60 = vmul.f32 %v1353_v48, %v1129_v35  ;;  %2314 = vtanh.f32 %v1295_v54  ;;  %v1296_v22 = vmul.f32 0.7978846, %v1264_v55  ;;  %v1265_v39 = vadd.f32 %v1233_v53, %v2940_v56 }
 0x144   : > { %v1202_v0 = vmul.f32 %v3001_v45, %v2933_v58  ;;  %v2307_v61 = vpop.eup %2306  ;;  %v1493_v50 = vsel %vm748_vm1, %v1423_v3, 0.0  ;;  %v1386_v1 = vmul.f32 %v1354_v63, %v1130_v41  ;;  %v1203_v33 = vmul.f32 %v3032_v11, %v2961_v46 }
 0x145   : > { %v1424_v8 = vmul.f32 %v2766_v31, %v1385_v60  ;;  %v2309_v4 = vpop.eup %2308  ;;  %1494 = vadd.xlane.f32.xlu1 %v1493_v50  ;;  %v1355_v7 = vadd.f32 1.0, %v2307_v61  ;;  %2316 = vtanh.f32 %v1296_v22  ;;  %v1297_v10 = vmul.f32 0.7978846, %v1265_v39 }
 0x146   : > { %v1234_v14 = vmul.f32 %v1202_v0, %v2933_v58  ;;  %v1425_v45 = vmul.f32 %v2766_v31, %v1386_v1  ;;  %v1356_v57 = vadd.f32 1.0, %v2309_v4  ;;  %v1235_v52 = vmul.f32 %v1203_v33, %v2961_v46 }
 0x147   : > { %v1496_v15 = vsel %vm748_vm1, %v1424_v8, 0.0  ;;  %v1387_v43 = vmul.f32 %v1355_v7, %v1131_v62  ;;  %2318 = vtanh.f32 %v1297_v10  ;;  %v1204_v30 = vmul.f32 %v3023_v42, %v2957_v17 }
 0x148   : > { %1497 = vadd.xlane.f32.xlu0 %v1496_v15  ;;  %v1266_v9 = vadd.f32 %v1234_v14, %v2933_v58  ;;  %v2311_v11 = vpop.eup %2310  ;;  %v1499_v21 = vsel %vm748_vm1, %v1425_v45, 0.0  ;;  %v1388_v35 = vmul.f32 %v1356_v57, %v1132_v23  ;;  %v1267_v5 = vadd.f32 %v1235_v52, %v2961_v46 }
 0x149   : > { %1500 = vadd.xlane.f32.xlu1 %v1499_v21  ;;  %v1426_v49 = vmul.f32 %v2766_v31, %v1387_v43  ;;  %v1133_v51 = vmul.f32 0.5, %v2894_v6  ;;  %v1357_v24 = vadd.f32 1.0, %v2311_v11  ;;  %v1134_v32 = vmul.f32 0.5, %v2888_v2 }
 0x14a   : > { %v1298_v47 = vmul.f32 0.7978846, %v1266_v9  ;;  %v2313_v26 = vpop.eup %2312  ;;  %v1427_v28 = vmul.f32 %v2766_v31, %v1388_v35  ;;  %v1299_v25 = vmul.f32 0.7978846, %v1267_v5  ;;  %v1236_v34 = vmul.f32 %v1204_v30, %v2957_v17  ;;  %v3117_v9 = vld [vmem:[#allocation2] ss:$0 sm:$0xff] }
 0x14b   : > { %v1502_v41 = vsel %vm748_vm1, %v1426_v49, 0.0  ;;  %v1389_v59 = vmul.f32 %v1357_v24, %v1133_v51  ;;  %v1358_v36 = vadd.f32 1.0, %v2313_v26  ;;  %v1135_v2 = vmul.f32 0.5, %v2919_v40 }
 0x14c   : > { %2320 = vtanh.f32 %v1298_v47  ;;  %1503 = vadd.xlane.f32.xlu0 %v1502_v41  ;;  %v1505_v38 = vsel %vm748_vm1, %v1427_v28, 0.0  ;;  %v1268_v6 = vadd.f32 %v1236_v34, %v2957_v17  ;;  %v1136_v54 = vmul.f32 0.5, %v2911_v16 }
 0x14d   : > { %v2315_v42 = vpop.eup %2314  ;;  %2322 = vtanh.f32 %v1299_v25  ;;  %1506 = vadd.xlane.f32.xlu1 %v1505_v38  ;;  %v1428_v20 = vmul.f32 %v2766_v31, %v1389_v59  ;;  %v1390_v13 = vmul.f32 %v1358_v36, %v1134_v32  ;;  %v1137_v53 = vmul.f32 0.5, %v2940_v56 }
 0x14e   : > { %v1359_v19 = vadd.f32 1.0, %v2315_v42  ;;  %v1300_v44 = vmul.f32 0.7978846, %v1268_v6  ;;  %v1138_v61 = vmul.f32 0.5, %v2933_v58  ;;  %v1139_v8 = vmul.f32 0.5, %v2961_v46 }
 0x14f   : > { %v2317_v12 = vpop.eup %2316  ;;  %v1508_v27 = vsel %vm748_vm1, %v1428_v20, 0.0  ;;  %v1429_v18 = vmul.f32 %v2766_v31, %v1390_v13  ;;  %v1140_v15 = vmul.f32 0.5, %v2957_v17 }
 0x150   : > { %v1391_v48 = vmul.f32 %v1359_v19, %v1135_v2  ;;  %1509 = vadd.xlane.f32.xlu0 %v1508_v27  ;;  %v1360_v29 = vadd.f32 1.0, %v2317_v12  ;;  %2324 = vtanh.f32 %v1300_v44 }
 0x151   : > { %v2319_v37 = vpop.eup %2318  ;;  %v1511_v62 = vsel %vm748_vm1, %v1429_v18, 0.0 }
 0x152   : > { %v1430_v55 = vmul.f32 %v2766_v31, %v1391_v48  ;;  %1512 = vadd.xlane.f32.xlu1 %v1511_v62  ;;  %v1392_v40 = vmul.f32 %v1360_v29, %v1136_v54  ;;  %v1361_v3 = vadd.f32 1.0, %v2319_v37 }
 0x154   : > { %v1514_v60 = vsel %vm748_vm1, %v1430_v55, 0.0  ;;  %v1431_v63 = vmul.f32 %v2766_v31, %v1392_v40  ;;  %v1393_v23 = vmul.f32 %v1361_v3, %v1137_v53 }
 0x155   : > { %1515 = vadd.xlane.f32.xlu0 %v1514_v60 }
 0x156   : > { %v2321_v22 = vpop.eup %2320  ;;  %v1517_v39 = vsel %vm748_vm1, %v1431_v63, 0.0  ;;  %v1432_v0 = vmul.f32 %v2766_v31, %v1393_v23 }
 0x157   : > { %v2323_v16 = vpop.eup %2322  ;;  %v1362_v50 = vadd.f32 1.0, %v2321_v22  ;;  %1518 = vadd.xlane.f32.xlu1 %v1517_v39 }
 0x158   : > { %v1363_v56 = vadd.f32 1.0, %v2323_v16  ;;  %v1520_v1 = vsel %vm748_vm1, %v1432_v0, 0.0 }
 0x159   : > { %v1394_v33 = vmul.f32 %v1362_v50, %v1138_v61  ;;  %1521 = vadd.xlane.f32.xlu0 %v1520_v1 }
 0x15a   : > { %v1395_v4 = vmul.f32 %v1363_v56, %v1139_v8  ;;  %v2325_v7 = vpop.eup %2324 }
 0x15b   : > { %v1433_v10 = vmul.f32 %v2766_v31, %v1394_v33  ;;  %v1364_v45 = vadd.f32 1.0, %v2325_v7 }
 0x15c   : > { %v1434_v14 = vmul.f32 %v2766_v31, %v1395_v4 }
 0x15d   : > { %v1523_v58 = vsel %vm748_vm1, %v1433_v10, 0.0  ;;  %v1396_v46 = vmul.f32 %v1364_v45, %v1140_v15 }
 0x15e   : > { %1524 = vadd.xlane.f32.xlu1 %v1523_v58  ;;  %v1526_v57 = vsel %vm748_vm1, %v1434_v14, 0.0 }
 0x15f   : > { %1527 = vadd.xlane.f32.xlu0 %v1526_v57  ;;  %v1435_v52 = vmul.f32 %v2766_v31, %v1396_v46 }
 0x161   : > { %v1529_v43 = vsel %vm748_vm1, %v1435_v52, 0.0 }
 0x162   : > { %1530 = vadd.xlane.f32.xlu1 %v1529_v43 }
 0x196   : > { %v1441_v11 = vpop.xlane.xlu0 %1440 }
 0x197   : > { %v1540_v21 = vadd.f32 %v3117_v9, %v1441_v11 }
 0x199   : > { %v1980_v35 = vmul.f32 -1.442695, %v1540_v21 }
 0x19a   : > { %v1447_v17 = vpop.xlane.xlu1 %1446  ;;  %v1438_v5 = vpop.xlane.xlu0 %1437 }
 0x19b   : > { %2326 = vpow2.f32 %v1980_v35  ;;  %v1542_v30 = vadd.f32 %v3117_v9, %v1447_v17  ;;  %v1539_v49 = vadd.f32 %v3117_v9, %v1438_v5 }
 0x19d   : > { %v1982_v51 = vmul.f32 -1.442695, %v1542_v30  ;;  %v1979_v24 = vmul.f32 -1.442695, %v1539_v49 }
 0x19e   : > { %v1444_v47 = vpop.xlane.xlu1 %1443 }
 0x19f   : > { %2328 = vpow2.f32 %v1982_v51  ;;  %v1541_v31 = vadd.f32 %v3117_v9, %v1444_v47  ;;  %v1450_v26 = vpop.xlane.xlu0 %1449 }
 0x1a0   : > { %2330 = vpow2.f32 %v1979_v24  ;;  %v1543_v28 = vadd.f32 %v3117_v9, %v1450_v26 }
 0x1a1   : > { %v1981_v32 = vmul.f32 -1.442695, %v1541_v31 }
 0x1a2   : > { %v1983_v25 = vmul.f32 -1.442695, %v1543_v28  ;;  %v1453_v34 = vpop.xlane.xlu1 %1452 }
 0x1a3   : > { %2332 = vpow2.f32 %v1981_v32  ;;  %v1544_v41 = vadd.f32 %v3117_v9, %v1453_v34  ;;  %v1456_v59 = vpop.xlane.xlu0 %1455 }
 0x1a4   : > { %2334 = vpow2.f32 %v1983_v25  ;;  %v1545_v38 = vadd.f32 %v3117_v9, %v1456_v59 }
 0x1a5   : > { %v2327_v36 = vpop.eup %2326  ;;  %v1984_v42 = vmul.f32 -1.442695, %v1544_v41 }
 0x1a6   : > { %v1668_v6 = vadd.f32 1.0, %v2327_v36  ;;  %v1985_v20 = vmul.f32 -1.442695, %v1545_v38 }
 0x1a7   : > { %2336 = vpow2.f32 %v1984_v42  ;;  %v1459_v2 = vpop.xlane.xlu1 %1458 }
 0x1a8   : > { %2338 = vrcp.f32 %v1668_v6  ;;  %v1546_v12 = vadd.f32 %v3117_v9, %v1459_v2 }
 0x1a9   : > { %v2329_v13 = vpop.eup %2328  ;;  %2340 = vpow2.f32 %v1985_v20 }
 0x1aa   : > { %v2331_v19 = vpop.eup %2330  ;;  %v1670_v44 = vadd.f32 1.0, %v2329_v13  ;;  %v1986_v18 = vmul.f32 -1.442695, %v1546_v12 }
 0x1ab   : > { %v1667_v27 = vadd.f32 1.0, %v2331_v19  ;;  %v1462_v54 = vpop.xlane.xlu0 %1461 }
 0x1ac   : > { %2342 = vrcp.f32 %v1670_v44  ;;  %v1547_v62 = vadd.f32 %v3117_v9, %v1462_v54 }
 0x1ad   : > { %v2333_v48 = vpop.eup %2332  ;;  %2344 = vrcp.f32 %v1667_v27 }
 0x1ae   : > { %v2335_v29 = vpop.eup %2334  ;;  %v1669_v37 = vadd.f32 1.0, %v2333_v48  ;;  %2346 = vpow2.f32 %v1986_v18  ;;  %v1987_v40 = vmul.f32 -1.442695, %v1547_v62 }
 0x1af   : > { %v1671_v55 = vadd.f32 1.0, %v2335_v29 }
 0x1b0   : > { %2348 = vrcp.f32 %v1669_v37 }
 0x1b1   : > { %v2337_v53 = vpop.eup %2336  ;;  %2350 = vrcp.f32 %v1671_v55 }
 0x1b2   : > { %v2339_v3 = vpop.eup %2338  ;;  %v1672_v60 = vadd.f32 1.0, %v2337_v53  ;;  %2352 = vpow2.f32 %v1987_v40  ;;  %v1465_v22 = vpop.xlane.xlu1 %1464 }
 0x1b3   : > { %v2341_v63 = vpop.eup %2340  ;;  %1765 = vst.msk [vmem:[%s3132_s10 + $0x8] sm:$0xff] %vm1763_vm2, %v2339_v3  ;;  %v1548_v16 = vadd.f32 %v3117_v9, %v1465_v22 }
 0x1b4   : > { %2354 = vrcp.f32 %v1672_v60  ;;  %v1673_v23 = vadd.f32 1.0, %v2341_v63 }
 0x1b5   : > { %v1988_v61 = vmul.f32 -1.442695, %v1548_v16 }
 0x1b6   : > { %v2343_v39 = vpop.eup %2342  ;;  %2356 = vrcp.f32 %v1673_v23 }
 0x1b7   : > { %v2345_v0 = vpop.eup %2344  ;;  %1767 = vst.msk [vmem:[%s3132_s10 + $0x18] sm:$0xff] %vm1763_vm2, %v2343_v39  ;;  %2358 = vpow2.f32 %v1988_v61  ;;  %v1468_v56 = vpop.xlane.xlu0 %1467 }
 0x1b8   : > { %v2347_v50 = vpop.eup %2346  ;;  %1764 = vst.msk [vmem:[%s3132_s10] sm:$0xff] %vm1763_vm2, %v2345_v0  ;;  %v1549_v33 = vadd.f32 %v3117_v9, %v1468_v56 }
 0x1b9   : > { %v1674_v8 = vadd.f32 1.0, %v2347_v50 }
 0x1ba   : > { %v2349_v1 = vpop.eup %2348  ;;  %v1989_v10 = vmul.f32 -1.442695, %v1549_v33 }
 0x1bb   : > { %v2351_v4 = vpop.eup %2350  ;;  %1766 = vst.msk [vmem:[%s3132_s10 + $0x10] sm:$0xff] %vm1763_vm2, %v2349_v1  ;;  %2360 = vrcp.f32 %v1674_v8  ;;  %v1471_v15 = vpop.xlane.xlu1 %1470 }
 0x1bc   : > { %v2353_v7 = vpop.eup %2352  ;;  %1768 = vst.msk [vmem:[%s3132_s10 + $0x20] sm:$0xff] %vm1763_vm2, %v2351_v4  ;;  %2362 = vpow2.f32 %v1989_v10  ;;  %v1550_v58 = vadd.f32 %v3117_v9, %v1471_v15 }
 0x1bd   : > { %v1675_v14 = vadd.f32 1.0, %v2353_v7 }
 0x1be   : > { %v2355_v45 = vpop.eup %2354  ;;  %v1990_v46 = vmul.f32 -1.442695, %v1550_v58  ;;  %v1474_v52 = vpop.xlane.xlu0 %1473 }
 0x1bf   : > { %1769 = vst.msk [vmem:[%s3132_s10 + $0x28] sm:$0xff] %vm1763_vm2, %v2355_v45  ;;  %2364 = vrcp.f32 %v1675_v14  ;;  %v1551_v43 = vadd.f32 %v3117_v9, %v1474_v52  ;;  %v1477_v11 = vpop.xlane.xlu1 %1476 }
 0x1c0   : > { %v2357_v57 = vpop.eup %2356  ;;  %2366 = vpow2.f32 %v1990_v46  ;;  %v1552_v21 = vadd.f32 %v3117_v9, %v1477_v11 }
 0x1c1   : > { %1770 = vst.msk [vmem:[%s3132_s10 + $0x30] sm:$0xff] %vm1763_vm2, %v2357_v57  ;;  %v2359_v35 = vpop.eup %2358  ;;  %v1991_v17 = vmul.f32 -1.442695, %v1551_v43 }
 0x1c2   : > { %v1676_v5 = vadd.f32 1.0, %v2359_v35  ;;  %v1992_v30 = vmul.f32 -1.442695, %v1552_v21 }
 0x1c3   : > { %2368 = vpow2.f32 %v1991_v17 }
 0x1c4   : > { %2370 = vrcp.f32 %v1676_v5  ;;  %v1480_v51 = vpop.xlane.xlu0 %1479 }
 0x1c5   : > { %v2361_v49 = vpop.eup %2360  ;;  %2372 = vpow2.f32 %v1992_v30  ;;  %v1553_v24 = vadd.f32 %v3117_v9, %v1480_v51 }
 0x1c6   : > { %1771 = vst.msk [vmem:[%s3132_s10 + $0x38] sm:$0xff] %vm1763_vm2, %v2361_v49  ;;  %v2363_v47 = vpop.eup %2362 }
 0x1c7   : > { %v1677_v26 = vadd.f32 1.0, %v2363_v47  ;;  %v1993_v28 = vmul.f32 -1.442695, %v1553_v24 }
 0x1c9   : > { %v2365_v31 = vpop.eup %2364  ;;  %2374 = vrcp.f32 %v1677_v26  ;;  %v1483_v32 = vpop.xlane.xlu1 %1482 }
 0x1ca   : > { %1772 = vst.msk [vmem:[%s3132_s10 + $0x40] sm:$0xff] %vm1763_vm2, %v2365_v31  ;;  %v2367_v25 = vpop.eup %2366  ;;  %2376 = vpow2.f32 %v1993_v28  ;;  %v1554_v34 = vadd.f32 %v3117_v9, %v1483_v32 }
 0x1cb   : > { %v1486_v41 = vpop.xlane.xlu0 %1485  ;;  %v1678_v59 = vadd.f32 1.0, %v2367_v25 }
 0x1cc   : > { %v1555_v36 = vadd.f32 %v3117_v9, %v1486_v41  ;;  %v1994_v42 = vmul.f32 -1.442695, %v1554_v34 }
 0x1cd   : > { %v2369_v38 = vpop.eup %2368  ;;  %2378 = vrcp.f32 %v1678_v59  ;;  %v1489_v20 = vpop.xlane.xlu1 %1488 }
 0x1ce   : > { %v1995_v6 = vmul.f32 -1.442695, %v1555_v36  ;;  %v2371_v13 = vpop.eup %2370  ;;  %v1679_v2 = vadd.f32 1.0, %v2369_v38  ;;  %2380 = vpow2.f32 %v1994_v42  ;;  %v1556_v19 = vadd.f32 %v3117_v9, %v1489_v20 }
 0x1cf   : > { %v2373_v44 = vpop.eup %2372  ;;  %1773 = vst.msk [vmem:[%s3132_s10 + $0x48] sm:$0xff] %vm1763_vm2, %v2371_v13 }
 0x1d0   : > { %2382 = vpow2.f32 %v1995_v6  ;;  %v1492_v12 = vpop.xlane.xlu0 %1491  ;;  %v1680_v27 = vadd.f32 1.0, %v2373_v44  ;;  %v1996_v18 = vmul.f32 -1.442695, %v1556_v19 }
 0x1d1   : > { %2384 = vrcp.f32 %v1679_v2  ;;  %v1557_v48 = vadd.f32 %v3117_v9, %v1492_v12 }
 0x1d2   : > { %2386 = vrcp.f32 %v1680_v27  ;;  %v1495_v29 = vpop.xlane.xlu1 %1494 }
 0x1d3   : > { %v1997_v54 = vmul.f32 -1.442695, %v1557_v48  ;;  %v2375_v37 = vpop.eup %2374  ;;  %2388 = vpow2.f32 %v1996_v18  ;;  %v1558_v62 = vadd.f32 %v3117_v9, %v1495_v29 }
 0x1d4   : > { %v2377_v55 = vpop.eup %2376  ;;  %1774 = vst.msk [vmem:[%s3132_s10 + $0x50] sm:$0xff] %vm1763_vm2, %v2375_v37 }
 0x1d5   : > { %2390 = vpow2.f32 %v1997_v54  ;;  %v1498_v40 = vpop.xlane.xlu0 %1497  ;;  %v1681_v53 = vadd.f32 1.0, %v2377_v55  ;;  %v1998_v3 = vmul.f32 -1.442695, %v1558_v62 }
 0x1d6   : > { %v1559_v60 = vadd.f32 %v3117_v9, %v1498_v40  ;;  %v1501_v63 = vpop.xlane.xlu1 %1500 }
 0x1d7   : > { %v2379_v23 = vpop.eup %2378  ;;  %2392 = vrcp.f32 %v1681_v53  ;;  %v1560_v16 = vadd.f32 %v3117_v9, %v1501_v63 }
 0x1d8   : > { %v1999_v22 = vmul.f32 -1.442695, %v1559_v60  ;;  %v2381_v39 = vpop.eup %2380  ;;  %1775 = vst.msk [vmem:[%s3132_s10 + $0x58] sm:$0xff] %vm1763_vm2, %v2379_v23  ;;  %2394 = vpow2.f32 %v1998_v3 }
 0x1d9   : > { %v1682_v61 = vadd.f32 1.0, %v2381_v39  ;;  %v2000_v50 = vmul.f32 -1.442695, %v1560_v16  ;;  %v1504_v8 = vpop.xlane.xlu0 %1503 }
 0x1da   : > { %v2383_v0 = vpop.eup %2382  ;;  %2396 = vpow2.f32 %v1999_v22  ;;  %v1561_v33 = vadd.f32 %v3117_v9, %v1504_v8  ;;  %v1507_v4 = vpop.xlane.xlu1 %1506 }
 0x1db   : > { %v2385_v56 = vpop.eup %2384  ;;  %v1683_v1 = vadd.f32 1.0, %v2383_v0  ;;  %2398 = vrcp.f32 %v1682_v61  ;;  %v1562_v7 = vadd.f32 %v3117_v9, %v1507_v4 }
 0x1dc   : > { %1776 = vst.msk [vmem:[%s3132_s10 + $0x60] sm:$0xff] %vm1763_vm2, %v2385_v56  ;;  %v2387_v10 = vpop.eup %2386  ;;  %v2001_v14 = vmul.f32 -1.442695, %v1561_v33 }
 0x1dd   : > { %2400 = vrcp.f32 %v1683_v1  ;;  %v2389_v15 = vpop.eup %2388  ;;  %1777 = vst.msk [vmem:[%s3132_s10 + $0x68] sm:$0xff] %vm1763_vm2, %v2387_v10  ;;  %v2002_v45 = vmul.f32 -1.442695, %v1562_v7  ;;  %v1510_v58 = vpop.xlane.xlu0 %1509 }
 0x1de   : > { %2402 = vpow2.f32 %v2000_v50  ;;  %v1684_v46 = vadd.f32 1.0, %v2389_v15  ;;  %v1563_v52 = vadd.f32 %v3117_v9, %v1510_v58 }
 0x1df   : > { %v2391_v57 = vpop.eup %2390  ;;  %2404 = vpow2.f32 %v2001_v14  ;;  %v1513_v11 = vpop.xlane.xlu1 %1512 }
 0x1e0   : > { %v1685_v43 = vadd.f32 1.0, %v2391_v57  ;;  %2406 = vpow2.f32 %v2002_v45  ;;  %v2003_v21 = vmul.f32 -1.442695, %v1563_v52  ;;  %v1564_v35 = vadd.f32 %v3117_v9, %v1513_v11 }
 0x1e1   : > { %2408 = vrcp.f32 %v1684_v46  ;;  %v2393_v17 = vpop.eup %2392 }
 0x1e2   : > { %2410 = vrcp.f32 %v1685_v43  ;;  %v1516_v5 = vpop.xlane.xlu0 %1515  ;;  %v2395_v30 = vpop.eup %2394  ;;  %1778 = vst.msk [vmem:[%s3132_s10 + $0x70] sm:$0xff] %vm1763_vm2, %v2393_v17  ;;  %v2004_v49 = vmul.f32 -1.442695, %v1564_v35 }
 0x1e3   : > { %2412 = vpow2.f32 %v2003_v21  ;;  %v1565_v51 = vadd.f32 %v3117_v9, %v1516_v5  ;;  %v1686_v47 = vadd.f32 1.0, %v2395_v30 }
 0x1e4   : > { %v2397_v24 = vpop.eup %2396  ;;  %2414 = vpow2.f32 %v2004_v49  ;;  %v1519_v28 = vpop.xlane.xlu1 %1518 }
 0x1e5   : > { %v1687_v31 = vadd.f32 1.0, %v2397_v24  ;;  %v2005_v26 = vmul.f32 -1.442695, %v1565_v51  ;;  %v2399_v32 = vpop.eup %2398  ;;  %2416 = vrcp.f32 %v1686_v47  ;;  %v1566_v25 = vadd.f32 %v3117_v9, %v1519_v28 }
 0x1e6   : > { %1779 = vst.msk [vmem:[%s3132_s10 + $0x78] sm:$0xff] %vm1763_vm2, %v2399_v32  ;;  %v1522_v41 = vpop.xlane.xlu0 %1521 }
 0x1e7   : > { %v2401_v34 = vpop.eup %2400  ;;  %2418 = vrcp.f32 %v1687_v31  ;;  %v2006_v36 = vmul.f32 -1.442695, %v1566_v25  ;;  %v1567_v42 = vadd.f32 %v3117_v9, %v1522_v41 }
 0x1e8   : > { %v2403_v59 = vpop.eup %2402  ;;  %1780 = vst.msk [vmem:[%s3132_s10 + $0x80] sm:$0xff] %vm1763_vm2, %v2401_v34  ;;  %2420 = vpow2.f32 %v2005_v26 }
 0x1e9   : > { %v2405_v38 = vpop.eup %2404  ;;  %v1688_v6 = vadd.f32 1.0, %v2403_v59  ;;  %2422 = vpow2.f32 %v2006_v36  ;;  %v2007_v2 = vmul.f32 -1.442695, %v1567_v42 }
 0x1ea   : > { %v2407_v20 = vpop.eup %2406  ;;  %v1689_v13 = vadd.f32 1.0, %v2405_v38 }
 0x1eb   : > { %v2409_v19 = vpop.eup %2408  ;;  %2424 = vrcp.f32 %v1688_v6  ;;  %v1690_v44 = vadd.f32 1.0, %v2407_v20  ;;  %v1525_v12 = vpop.xlane.xlu1 %1524 }
 0x1ec   : > { %v2411_v27 = vpop.eup %2410  ;;  %1781 = vst.msk [vmem:[%s3132_s10 + $0x88] sm:$0xff] %vm1763_vm2, %v2409_v19  ;;  %2426 = vrcp.f32 %v1689_v13  ;;  %v1568_v18 = vadd.f32 %v3117_v9, %v1525_v12  ;;  %v1528_v48 = vpop.xlane.xlu0 %1527 }
 0x1ed   : > { %v2413_v54 = vpop.eup %2412  ;;  %1782 = vst.msk [vmem:[%s3132_s10 + $0x90] sm:$0xff] %vm1763_vm2, %v2411_v27  ;;  %2428 = vrcp.f32 %v1690_v44  ;;  %v1569_v29 = vadd.f32 %v3117_v9, %v1528_v48 }
 0x1ee   : > { %v1691_v37 = vadd.f32 1.0, %v2413_v54  ;;  %2430 = vpow2.f32 %v2007_v2  ;;  %v2008_v62 = vmul.f32 -1.442695, %v1568_v18  ;;  %v2415_v55 = vpop.eup %2414 }
 0x1ef   : > { %v2009_v40 = vmul.f32 -1.442695, %v1569_v29  ;;  %v2417_v53 = vpop.eup %2416  ;;  %v1692_v3 = vadd.f32 1.0, %v2415_v55  ;;  %v1531_v60 = vpop.xlane.xlu1 %1530 }
 0x1f0   : > { %2432 = vrcp.f32 %v1691_v37  ;;  %1783 = vst.msk [vmem:[%s3132_s10 + $0x98] sm:$0xff] %vm1763_vm2, %v2417_v53  ;;  %v1570_v23 = vadd.f32 %v3117_v9, %v1531_v60 }
 0x1f1   : > { %v2419_v63 = vpop.eup %2418  ;;  %2434 = vpow2.f32 %v2008_v62 }
 0x1f2   : > { %v2421_v22 = vpop.eup %2420  ;;  %1784 = vst.msk [vmem:[%s3132_s10 + $0xa0] sm:$0xff] %vm1763_vm2, %v2419_v63  ;;  %2436 = vrcp.f32 %v1692_v3  ;;  %v2010_v39 = vmul.f32 -1.442695, %v1570_v23 }
 0x1f3   : > { %v1693_v16 = vadd.f32 1.0, %v2421_v22  ;;  %2438 = vpow2.f32 %v2009_v40  ;;  %v2423_v0 = vpop.eup %2422 }
 0x1f4   : > { %v1694_v50 = vadd.f32 1.0, %v2423_v0 }
 0x1f5   : > { %v2425_v61 = vpop.eup %2424  ;;  %2440 = vrcp.f32 %v1693_v16 }
 0x1f6   : > { %v2427_v8 = vpop.eup %2426  ;;  %1785 = vst.msk [vmem:[%s3132_s10 + $0xa8] sm:$0xff] %vm1763_vm2, %v2425_v61  ;;  %2442 = vpow2.f32 %v2010_v39 }
 0x1f7   : > { %v2429_v56 = vpop.eup %2428  ;;  %1786 = vst.msk [vmem:[%s3132_s10 + $0xb0] sm:$0xff] %vm1763_vm2, %v2427_v8  ;;  %2444 = vrcp.f32 %v1694_v50 }
 0x1f8   : > { %v2431_v9 = vpop.eup %2430  ;;  %1787 = vst.msk [vmem:[%s3132_s10 + $0xb8] sm:$0xff] %vm1763_vm2, %v2429_v56 }
 0x1f9   : > { %v1695_v1 = vadd.f32 1.0, %v2431_v9 }
 0x1fa   : > { %v2433_v33 = vpop.eup %2432 }
 0x1fb   : > { %v2435_v4 = vpop.eup %2434  ;;  %1788 = vst.msk [vmem:[%s3132_s10 + $0xc0] sm:$0xff] %vm1763_vm2, %v2433_v33  ;;  %2446 = vrcp.f32 %v1695_v1 }
 0x1fc   : > { %v2437_v7 = vpop.eup %2436  ;;  %v1696_v10 = vadd.f32 1.0, %v2435_v4 }
 0x1fd   : > { %v2439_v14 = vpop.eup %2438  ;;  %1789 = vst.msk [vmem:[%s3132_s10 + $0xc8] sm:$0xff] %vm1763_vm2, %v2437_v7 }
 0x1fe   : > { %2448 = vrcp.f32 %v1696_v10  ;;  %v1697_v15 = vadd.f32 1.0, %v2439_v14 }
 0x1ff   : > { %v2441_v45 = vpop.eup %2440 }
 0x200   : > { %v2443_v58 = vpop.eup %2442  ;;  %1790 = vst.msk [vmem:[%s3132_s10 + $0xd0] sm:$0xff] %vm1763_vm2, %v2441_v45  ;;  %2450 = vrcp.f32 %v1697_v15 }
 0x201   : > { %v2445_v57 = vpop.eup %2444  ;;  %v1698_v46 = vadd.f32 1.0, %v2443_v58 }
 0x202   : > { %1791 = vst.msk [vmem:[%s3132_s10 + $0xd8] sm:$0xff] %vm1763_vm2, %v2445_v57 }
 0x203   : > { %2452 = vrcp.f32 %v1698_v46 }
 0x205   : > { %v2447_v52 = vpop.eup %2446 }
 0x206   : > { %1792 = vst.msk [vmem:[%s3132_s10 + $0xe0] sm:$0xff] %vm1763_vm2, %v2447_v52 }
 0x208   : > { %v2449_v43 = vpop.eup %2448 }
 0x209   : > { %1793 = vst.msk [vmem:[%s3132_s10 + $0xe8] sm:$0xff] %vm1763_vm2, %v2449_v43 }
 0x20a   : > { %v2451_v11 = vpop.eup %2450 }
 0x20b   : > { %1794 = vst.msk [vmem:[%s3132_s10 + $0xf0] sm:$0xff] %vm1763_vm2, %v2451_v11 }
 0x20d   : > { %v2453_v21 = vpop.eup %2452 }
 0x20e   : > { %1795 = vst.msk [vmem:[%s3132_s10 + $0xf8] sm:$0xff] %vm1763_vm2, %v2453_v21 }
 0x20f PF: > { %s19_s28 = sadd.s32 1, %s2476_s28   ;;  %s3238_s26 = smov %s2472_s27 }
 0x210   : > { %p16_p5 = scmp.ge.s32.totalorder %s19_s28, 4   ;;  %s3239_s27 = smov %s3241_s6 }
 0x212   :  { %18 = sbr.rel (!%p16_p5) target bundleno = 3 (0x3), region = 81 }

</bundles_post_ra>
